<compile_context>
chip_gen: v6e
topology: v6e:2x2x1
jax: 0.10.0
libtpu: 0.0.40
codegen_flags: <defaults>
</compile_context>

<pallas_src>
import numpy as np
import jax
import jax.numpy as jnp
from jax import lax
from jax.experimental import pallas as pl
from jax.experimental.pallas import tpu as pltpu

EPS = 1e-5      # torch BatchNorm2d default
CG = 8          # per-pixel channel-group width in lanes (>= max(cin, cout), power of 2)
H_OFF = 8       # sublane-aligned start of the image rows inside the padded scratch


def make_residual_block_kernel(N, H, W, eps=EPS):
    """Kernel closure for static shapes.  Lane layout: lane = w*CG + c, L = W*CG."""
    L = W * CG
    NH = N * H
    inv_count = 1.0 / float(N * H * W)

    def fold_w(s):
        # (1, L) per-(w, c) sums -> per-channel sums replicated at every w lane group.
        # Hypercube all-reduce over the W lane groups via XLU lane rolls (idle slot).
        sh = CG
        while sh < L:
            s = s + pltpu.roll(s, sh, axis=1)
            sh *= 2
        return s

    def relu_bn(y, g, be):
        # ReLU then train-mode BatchNorm (biased variance over N*H*W, eps=1e-5),
        # two-pass variance for numerical robustness.  All passes are 4-vreg wide.
        y = jnp.maximum(y, 0.0)
        m = fold_w(jnp.sum(y, axis=0, keepdims=True)) * inv_count
        d = y - m
        v = fold_w(jnp.sum(d * d, axis=0, keepdims=True)) * inv_count
        return d * (g * lax.rsqrt(v + eps)) + be

    def kernel(x_ref,                              # (N, H, L) input, (w, c)-in-lanes layout
               wb1_ref, b1_ref, g1_ref, be1_ref,   # (3L, L), (1, L) x3
               wb2_ref, b2_ref, g2_ref, be2_ref,
               wb3_ref, b3_ref, g3_ref, be3_ref,
               wsk_ref, bsk_ref,                   # (L, L), (1, L)
               out_ref,                            # (N*H, L) lane-dense 2D output
               pad_ref):                           # VMEM scratch (N, H_OFF+H+1, L)

        # Zero ONLY the two H-halo rows, exactly once (rows < H_OFF-1 are never read;
        # the "SAME" padding along W is encoded in the band matrices, no W halo needed).
        zrow = jnp.zeros((N, 1, L), jnp.float32)
        pad_ref[:, H_OFF - 1:H_OFF, :] = zrow
        pad_ref[:, H_OFF + H:H_OFF + H + 1, :] = zrow

        def repad(y):                              # (NH, L) -> sublane-aligned interior rows
            pad_ref[:, H_OFF:H_OFF + H, :] = y.reshape(N, H, L)

        def conv3x3(wb_ref, b_ref):
            # ONE MXU dot per conv: dy slabs concatenated along lanes (128-aligned
            # offsets), (dx, c) taps + W zero-padding folded into the band weights.
            lhs = jnp.concatenate(
                [pad_ref[:, H_OFF - 1 + dy:H_OFF - 1 + dy + H, :] for dy in range(3)],
                axis=-1,
            ).reshape(NH, 3 * L)
            return jnp.dot(lhs, wb_ref[...],
                           preferred_element_type=jnp.float32) + b_ref[...]

        x = x_ref[...].reshape(NH, L)

        # ---- conv block: 3x (conv3x3 -> ReLU -> BatchNorm) ----
        repad(x)
        y = relu_bn(conv3x3(wb1_ref, b1_ref), g1_ref[...], be1_ref[...])
        repad(y)
        y = relu_bn(conv3x3(wb2_ref, b2_ref), g2_ref[...], be2_ref[...])
        repad(y)
        y = relu_bn(conv3x3(wb3_ref, b3_ref), g3_ref[...], be3_ref[...])

        # ---- 1x1 skip conv on the original input + residual add ----
        skip = jnp.dot(x, wsk_ref[...], preferred_element_type=jnp.float32) + bsk_ref[...]
        out_ref[...] = skip + y

    return kernel


# ---------------- host-side packing into the (w, c)-in-lanes layout ----------------
def _band_weight(w, W, L):
    """(3, 3, ci, co) HWIO conv weight -> (3L, L) band matrix.

    Row dy*L + wi*CG + c, column wo*CG + o holds w[dy, dx, c, o] with wi = wo + dx - 1;
    out-of-range wi rows are simply absent, which encodes 'SAME' zero padding along W.
    """
    kh, kw, ci, co = w.shape
    wn = np.asarray(w, np.float32)
    wb = np.zeros((kh, L, L), np.float32)
    for dy in range(kh):
        for dx in range(kw):
            for wo in range(W):
                wi = wo + dx - 1
                if 0 <= wi < W:
                    wb[dy, wi * CG:wi * CG + ci, wo * CG:wo * CG + co] = wn[dy, dx]
    return jnp.asarray(wb.reshape(kh * L, L))


def _skip_weight(w, W, L):
    """(ci, co) 1x1 conv weight -> (L, L) block-diagonal matrix."""
    ci, co = w.shape
    wn = np.asarray(w, np.float32)
    ws = np.zeros((L, L), np.float32)
    for wo in range(W):
        ws[wo * CG:wo * CG + ci, wo * CG:wo * CG + co] = wn
    return jnp.asarray(ws)


def _rep_vec(v, W, L):
    """(1, co) per-channel vector -> (1, L), replicated at every w lane group."""
    vn = np.asarray(v, np.float32).reshape(-1)
    out = np.zeros((1, L), np.float32)
    for wo in range(W):
        out[0, wo * CG:wo * CG + vn.shape[0]] = vn
    return jnp.asarray(out)


def residual_block_forward(x_nhwc, p):
    N, H, W, cin = x_nhwc.shape
    cout = p["w1"].shape[-1]
    assert max(cin, cout) <= CG, "channel group too small for this layer width"
    assert W & (W - 1) == 0, "lane-roll BN fold requires W to be a power of two"
    L = W * CG
    assert L % 128 == 0, "W*CG must be a multiple of 128 for lane-dense tiles"
    # TODO(synk): general W (non-pow2 / W*CG % 128 != 0) needs a matmul-based per-channel
    # fold and masked output stores; not required for these shapes.
    NH = N * H

    # input -> (N, H, L) with lane = w*CG + c (padded channel lanes stay zero throughout)
    xl = jnp.zeros((N, H, W, CG), jnp.float32).at[..., :cin].set(x_nhwc).reshape(N, H, L)

    args = (
        xl,
        _band_weight(p["w1"], W, L), _rep_vec(p["b1"], W, L),
        _rep_vec(p["g1"], W, L), _rep_vec(p["be1"], W, L),
        _band_weight(p["w2"], W, L), _rep_vec(p["b2"], W, L),
        _rep_vec(p["g2"], W, L), _rep_vec(p["be2"], W, L),
        _band_weight(p["w3"], W, L), _rep_vec(p["b3"], W, L),
        _rep_vec(p["g3"], W, L), _rep_vec(p["be3"], W, L),
        _skip_weight(p["wsk"], W, L), _rep_vec(p["bsk"], W, L),
    )

    vmem = pl.BlockSpec(memory_space=pltpu.MemorySpace.VMEM)
    out2d = pl.pallas_call(
        make_residual_block_kernel(N, H, W),
        out_shape=jax.ShapeDtypeStruct((NH, L), jnp.float32),
        in_specs=[vmem] * len(args),
        out_specs=vmem,
        scratch_shapes=[pltpu.VMEM((N, H_OFF + H + 1, L), jnp.float32)],
    )(*args)

    return out2d.reshape(N, H, W, CG)[..., :cout]


# ---------------- deterministic parameter init (synthetic) ----------------
def init_params(key, cin, cout):
    ks = jax.random.split(key, 8)

    def conv_w(k, ci, co, ksize):
        fan_in = ci * ksize * ksize
        return jax.random.normal(k, (ksize, ksize, ci, co), jnp.float32) / jnp.sqrt(fan_in)

    p = {
        "w1": conv_w(ks[0], cin, cout, 3),
        "b1": 0.1 * jax.random.normal(ks[1], (1, cout), jnp.float32),
        "w2": conv_w(ks[2], cout, cout, 3),
        "b2": 0.1 * jax.random.normal(ks[3], (1, cout), jnp.float32),
        "w3": conv_w(ks[4], cout, cout, 3),
        "b3": 0.1 * jax.random.normal(ks[5], (1, cout), jnp.float32),
        "wsk": jax.random.normal(ks[6], (cin, cout), jnp.float32) / jnp.sqrt(cin),
        "bsk": 0.1 * jax.random.normal(ks[7], (1, cout), jnp.float32),
    }
    for i in (1, 2, 3):
        p[f"g{i}"] = jnp.ones((1, cout), jnp.float32)    # BatchNorm2d default weight
        p[f"be{i}"] = jnp.zeros((1, cout), jnp.float32)  # BatchNorm2d default bias
    return p


# ---------------- pure-JAX reference (for correctness check) ----------------
def ref_forward(x, p, eps=EPS):
    def conv_act_norm(y, w, b, g, be):
        y = lax.conv_general_dilated(
            y, w, (1, 1), "SAME",
            dimension_numbers=("NHWC", "HWIO", "NHWC"),
            precision=lax.Precision.HIGHEST) + b
        y = jnp.maximum(y, 0.0)
        m = jnp.mean(y, axis=(0, 1, 2), keepdims=True)
        v = jnp.mean((y - m) ** 2, axis=(0, 1, 2), keepdims=True)
        return (y - m) * lax.rsqrt(v + eps) * g + be

    h = conv_act_norm(x, p["w1"], p["b1"], p["g1"], p["be1"])
    h = conv_act_norm(h, p["w2"], p["b2"], p["g2"], p["be2"])
    h = conv_act_norm(h, p["w3"], p["b3"], p["g3"], p["be3"])
    skip = jnp.einsum("nhwc,co->nhwo", x, p["wsk"],
                      precision=lax.Precision.HIGHEST) + p["bsk"]
    return skip + h


if __name__ == "__main__":
    N, H, W, CIN, COUT = 2, 16, 16, 4, 8   # in_channels != out_channels -> skip conv path

    key = jax.random.PRNGKey(0)
    kx, kp = jax.random.split(key)
    x = jax.random.normal(kx, (N, H, W, CIN), jnp.float32)
    params = init_params(kp, CIN, COUT)

    out = jax.block_until_ready(residual_block_forward(x, params))
    ref = jax.block_until_ready(ref_forward(x, params))

    max_err = float(jnp.max(jnp.abs(out - ref)))
    assert out.shape == (N, H, W, COUT), out.shape
    assert max_err < 1e-3, f"max abs error {max_err}"

    print("KERNEL_OK")
</pallas_src>

<mosaic_0001>
module attributes {stable_mosaic.version = 11 : i64} {
  func.func @kernel(%arg0: memref<2x16x128xf32, #tpu.memory_space<vmem>>, %arg1: memref<384x128xf32, #tpu.memory_space<vmem>>, %arg2: memref<1x128xf32, #tpu.memory_space<vmem>>, %arg3: memref<1x128xf32, #tpu.memory_space<vmem>>, %arg4: memref<1x128xf32, #tpu.memory_space<vmem>>, %arg5: memref<384x128xf32, #tpu.memory_space<vmem>>, %arg6: memref<1x128xf32, #tpu.memory_space<vmem>>, %arg7: memref<1x128xf32, #tpu.memory_space<vmem>>, %arg8: memref<1x128xf32, #tpu.memory_space<vmem>>, %arg9: memref<384x128xf32, #tpu.memory_space<vmem>>, %arg10: memref<1x128xf32, #tpu.memory_space<vmem>>, %arg11: memref<1x128xf32, #tpu.memory_space<vmem>>, %arg12: memref<1x128xf32, #tpu.memory_space<vmem>>, %arg13: memref<128x128xf32, #tpu.memory_space<vmem>>, %arg14: memref<1x128xf32, #tpu.memory_space<vmem>>, %arg15: memref<32x128xf32, #tpu.memory_space<vmem>>, %arg16: memref<2x25x128xf32, #tpu.memory_space<vmem>>) attributes {dimension_semantics = [], scalar_prefetch = 0 : i64, scratch_operands = 1 : i64, tpu.core_type = #tpu.core_type<tc>} {
    %cst = arith.constant 0.000000e+00 : f32
    %0 = vector.broadcast %cst : f32 to vector<2x1x128xf32>
    %c0 = arith.constant 0 : index
    %c7 = arith.constant 7 : index
    %c0_0 = arith.constant 0 : index
    %1 = vector.load %arg16[%c0, %c7, %c0_0] : memref<2x25x128xf32, #tpu.memory_space<vmem>>, vector<2x1x128xf32>
    tpu.vector_store %arg16[%c0, %c7, %c0_0], %0 {strides = array<i32>} : memref<2x25x128xf32, #tpu.memory_space<vmem>>, vector<2x1x128xf32>,
    %c0_1 = arith.constant 0 : index
    %c24 = arith.constant 24 : index
    %c0_2 = arith.constant 0 : index
    %2 = vector.load %arg16[%c0_1, %c24, %c0_2] : memref<2x25x128xf32, #tpu.memory_space<vmem>>, vector<2x1x128xf32>
    tpu.vector_store %arg16[%c0_1, %c24, %c0_2], %0 {strides = array<i32>} : memref<2x25x128xf32, #tpu.memory_space<vmem>>, vector<2x1x128xf32>,
    %c0_3 = arith.constant 0 : index
    %c0_4 = arith.constant 0 : index
    %c0_5 = arith.constant 0 : index
    %3 = vector.load %arg0[%c0_3, %c0_4, %c0_5] : memref<2x16x128xf32, #tpu.memory_space<vmem>>, vector<2x16x128xf32>
    %4 = vector.shape_cast %3 : vector<2x16x128xf32> to vector<32x128xf32>
    %5 = vector.shape_cast %4 : vector<32x128xf32> to vector<2x16x128xf32>
    %c0_6 = arith.constant 0 : index
    %c8 = arith.constant 8 : index
    %c0_7 = arith.constant 0 : index
    %6 = vector.load %arg16[%c0_6, %c8, %c0_7] : memref<2x25x128xf32, #tpu.memory_space<vmem>>, vector<2x16x128xf32>
    tpu.vector_store %arg16[%c0_6, %c8, %c0_7], %5 {strides = array<i32>} : memref<2x25x128xf32, #tpu.memory_space<vmem>>, vector<2x16x128xf32>,
    %c0_8 = arith.constant 0 : index
    %c7_9 = arith.constant 7 : index
    %c0_10 = arith.constant 0 : index
    %7 = vector.load %arg16[%c0_8, %c7_9, %c0_10] : memref<2x25x128xf32, #tpu.memory_space<vmem>>, vector<2x16x128xf32>
    %c0_11 = arith.constant 0 : index
    %c8_12 = arith.constant 8 : index
    %c0_13 = arith.constant 0 : index
    %8 = vector.load %arg16[%c0_11, %c8_12, %c0_13] : memref<2x25x128xf32, #tpu.memory_space<vmem>>, vector<2x16x128xf32>
    %c0_14 = arith.constant 0 : index
    %c9 = arith.constant 9 : index
    %c0_15 = arith.constant 0 : index
    %9 = vector.load %arg16[%c0_14, %c9, %c0_15] : memref<2x25x128xf32, #tpu.memory_space<vmem>>, vector<2x16x128xf32>
    %10 = tpu.concatenate %7, %8, %9 in 2 : vector<2x16x128xf32>, vector<2x16x128xf32>, vector<2x16x128xf32> -> vector<2x16x384xf32>
    %11 = vector.shape_cast %10 : vector<2x16x384xf32> to vector<32x384xf32>
    %c0_16 = arith.constant 0 : index
    %c0_17 = arith.constant 0 : index
    %12 = vector.load %arg1[%c0_16, %c0_17] : memref<384x128xf32, #tpu.memory_space<vmem>>, vector<384x128xf32>
    %cst_18 = arith.constant dense<0.000000e+00> : vector<32x128xf32>
    %13 = tpu.matmul %11, %12, %cst_18 {dimension_numbers = #tpu.dot_dimension_numbers<[1], [0], [0], [1], [0, 0, 1, 1], [], []>} : vector<32x384xf32>, vector<384x128xf32>, vector<32x128xf32> -> vector<32x128xf32>
    %c0_19 = arith.constant 0 : index
    %c0_20 = arith.constant 0 : index
    %14 = vector.load %arg2[%c0_19, %c0_20] : memref<1x128xf32, #tpu.memory_space<vmem>>, vector<1x128xf32>
    %15 = vector.broadcast %14 : vector<1x128xf32> to vector<32x128xf32>
    %16 = arith.addf %13, %15 : vector<32x128xf32>
    %c0_21 = arith.constant 0 : index
    %c0_22 = arith.constant 0 : index
    %17 = vector.load %arg3[%c0_21, %c0_22] : memref<1x128xf32, #tpu.memory_space<vmem>>, vector<1x128xf32>
    %c0_23 = arith.constant 0 : index
    %c0_24 = arith.constant 0 : index
    %18 = vector.load %arg4[%c0_23, %c0_24] : memref<1x128xf32, #tpu.memory_space<vmem>>, vector<1x128xf32>
    %cst_25 = arith.constant 0.000000e+00 : f32
    %19 = vector.broadcast %cst_25 : f32 to vector<32x128xf32>
    %20 = arith.maximumf %16, %19 : vector<32x128xf32>
    %cst_26 = arith.constant dense<0.000000e+00> : vector<128xf32>
    %21 = vector.multi_reduction <add>, %20, %cst_26 [0] : vector<32x128xf32> to vector<128xf32>
    %22 = vector.shape_cast %21 : vector<128xf32> to vector<1x128xf32>
    %c8_i32 = arith.constant 8 : i32
    %23 = tpu.dynamic_rotate %22 by %c8_i32 dim 1 : vector<1x128xf32>, i32 -> vector<1x128xf32>
    %24 = arith.addf %22, %23 : vector<1x128xf32>
    %c16_i32 = arith.constant 16 : i32
    %25 = tpu.dynamic_rotate %24 by %c16_i32 dim 1 : vector<1x128xf32>, i32 -> vector<1x128xf32>
    %26 = arith.addf %24, %25 : vector<1x128xf32>
    %c32_i32 = arith.constant 32 : i32
    %27 = tpu.dynamic_rotate %26 by %c32_i32 dim 1 : vector<1x128xf32>, i32 -> vector<1x128xf32>
    %28 = arith.addf %26, %27 : vector<1x128xf32>
    %c64_i32 = arith.constant 64 : i32
    %29 = tpu.dynamic_rotate %28 by %c64_i32 dim 1 : vector<1x128xf32>, i32 -> vector<1x128xf32>
    %30 = arith.addf %28, %29 : vector<1x128xf32>
    %cst_27 = arith.constant 0.001953125 : f32
    %31 = vector.broadcast %cst_27 : f32 to vector<1x128xf32>
    %32 = arith.mulf %30, %31 : vector<1x128xf32>
    %33 = vector.broadcast %32 : vector<1x128xf32> to vector<32x128xf32>
    %34 = arith.subf %20, %33 : vector<32x128xf32>
    %35 = arith.mulf %34, %34 : vector<32x128xf32>
    %cst_28 = arith.constant dense<0.000000e+00> : vector<128xf32>
    %36 = vector.multi_reduction <add>, %35, %cst_28 [0] : vector<32x128xf32> to vector<128xf32>
    %37 = vector.shape_cast %36 : vector<128xf32> to vector<1x128xf32>
    %c8_i32_29 = arith.constant 8 : i32
    %38 = tpu.dynamic_rotate %37 by %c8_i32_29 dim 1 : vector<1x128xf32>, i32 -> vector<1x128xf32>
    %39 = arith.addf %37, %38 : vector<1x128xf32>
    %c16_i32_30 = arith.constant 16 : i32
    %40 = tpu.dynamic_rotate %39 by %c16_i32_30 dim 1 : vector<1x128xf32>, i32 -> vector<1x128xf32>
    %41 = arith.addf %39, %40 : vector<1x128xf32>
    %c32_i32_31 = arith.constant 32 : i32
    %42 = tpu.dynamic_rotate %41 by %c32_i32_31 dim 1 : vector<1x128xf32>, i32 -> vector<1x128xf32>
    %43 = arith.addf %41, %42 : vector<1x128xf32>
    %c64_i32_32 = arith.constant 64 : i32
    %44 = tpu.dynamic_rotate %43 by %c64_i32_32 dim 1 : vector<1x128xf32>, i32 -> vector<1x128xf32>
    %45 = arith.addf %43, %44 : vector<1x128xf32>
    %cst_33 = arith.constant 0.001953125 : f32
    %46 = vector.broadcast %cst_33 : f32 to vector<1x128xf32>
    %47 = arith.mulf %45, %46 : vector<1x128xf32>
    %cst_34 = arith.constant 9.99999974E-6 : f32
    %48 = vector.broadcast %cst_34 : f32 to vector<1x128xf32>
    %49 = arith.addf %47, %48 : vector<1x128xf32>
    %50 = math.rsqrt %49 : vector<1x128xf32>
    %51 = arith.mulf %17, %50 : vector<1x128xf32>
    %52 = vector.broadcast %51 : vector<1x128xf32> to vector<32x128xf32>
    %53 = arith.mulf %34, %52 : vector<32x128xf32>
    %54 = vector.broadcast %18 : vector<1x128xf32> to vector<32x128xf32>
    %55 = arith.addf %53, %54 : vector<32x128xf32>
    %56 = vector.shape_cast %55 : vector<32x128xf32> to vector<2x16x128xf32>
    %c0_35 = arith.constant 0 : index
    %c8_36 = arith.constant 8 : index
    %c0_37 = arith.constant 0 : index
    %57 = vector.load %arg16[%c0_35, %c8_36, %c0_37] : memref<2x25x128xf32, #tpu.memory_space<vmem>>, vector<2x16x128xf32>
    tpu.vector_store %arg16[%c0_35, %c8_36, %c0_37], %56 {strides = array<i32>} : memref<2x25x128xf32, #tpu.memory_space<vmem>>, vector<2x16x128xf32>,
    %c0_38 = arith.constant 0 : index
    %c7_39 = arith.constant 7 : index
    %c0_40 = arith.constant 0 : index
    %58 = vector.load %arg16[%c0_38, %c7_39, %c0_40] : memref<2x25x128xf32, #tpu.memory_space<vmem>>, vector<2x16x128xf32>
    %c0_41 = arith.constant 0 : index
    %c8_42 = arith.constant 8 : index
    %c0_43 = arith.constant 0 : index
    %59 = vector.load %arg16[%c0_41, %c8_42, %c0_43] : memref<2x25x128xf32, #tpu.memory_space<vmem>>, vector<2x16x128xf32>
    %c0_44 = arith.constant 0 : index
    %c9_45 = arith.constant 9 : index
    %c0_46 = arith.constant 0 : index
    %60 = vector.load %arg16[%c0_44, %c9_45, %c0_46] : memref<2x25x128xf32, #tpu.memory_space<vmem>>, vector<2x16x128xf32>
    %61 = tpu.concatenate %58, %59, %60 in 2 : vector<2x16x128xf32>, vector<2x16x128xf32>, vector<2x16x128xf32> -> vector<2x16x384xf32>
    %62 = vector.shape_cast %61 : vector<2x16x384xf32> to vector<32x384xf32>
    %c0_47 = arith.constant 0 : index
    %c0_48 = arith.constant 0 : index
    %63 = vector.load %arg5[%c0_47, %c0_48] : memref<384x128xf32, #tpu.memory_space<vmem>>, vector<384x128xf32>
    %cst_49 = arith.constant dense<0.000000e+00> : vector<32x128xf32>
    %64 = tpu.matmul %62, %63, %cst_49 {dimension_numbers = #tpu.dot_dimension_numbers<[1], [0], [0], [1], [0, 0, 1, 1], [], []>} : vector<32x384xf32>, vector<384x128xf32>, vector<32x128xf32> -> vector<32x128xf32>
    %c0_50 = arith.constant 0 : index
    %c0_51 = arith.constant 0 : index
    %65 = vector.load %arg6[%c0_50, %c0_51] : memref<1x128xf32, #tpu.memory_space<vmem>>, vector<1x128xf32>
    %66 = vector.broadcast %65 : vector<1x128xf32> to vector<32x128xf32>
    %67 = arith.addf %64, %66 : vector<32x128xf32>
    %c0_52 = arith.constant 0 : index
    %c0_53 = arith.constant 0 : index
    %68 = vector.load %arg7[%c0_52, %c0_53] : memref<1x128xf32, #tpu.memory_space<vmem>>, vector<1x128xf32>
    %c0_54 = arith.constant 0 : index
    %c0_55 = arith.constant 0 : index
    %69 = vector.load %arg8[%c0_54, %c0_55] : memref<1x128xf32, #tpu.memory_space<vmem>>, vector<1x128xf32>
    %cst_56 = arith.constant 0.000000e+00 : f32
    %70 = vector.broadcast %cst_56 : f32 to vector<32x128xf32>
    %71 = arith.maximumf %67, %70 : vector<32x128xf32>
    %cst_57 = arith.constant dense<0.000000e+00> : vector<128xf32>
    %72 = vector.multi_reduction <add>, %71, %cst_57 [0] : vector<32x128xf32> to vector<128xf32>
    %73 = vector.shape_cast %72 : vector<128xf32> to vector<1x128xf32>
    %c8_i32_58 = arith.constant 8 : i32
    %74 = tpu.dynamic_rotate %73 by %c8_i32_58 dim 1 : vector<1x128xf32>, i32 -> vector<1x128xf32>
    %75 = arith.addf %73, %74 : vector<1x128xf32>
    %c16_i32_59 = arith.constant 16 : i32
    %76 = tpu.dynamic_rotate %75 by %c16_i32_59 dim 1 : vector<1x128xf32>, i32 -> vector<1x128xf32>
    %77 = arith.addf %75, %76 : vector<1x128xf32>
    %c32_i32_60 = arith.constant 32 : i32
    %78 = tpu.dynamic_rotate %77 by %c32_i32_60 dim 1 : vector<1x128xf32>, i32 -> vector<1x128xf32>
    %79 = arith.addf %77, %78 : vector<1x128xf32>
    %c64_i32_61 = arith.constant 64 : i32
    %80 = tpu.dynamic_rotate %79 by %c64_i32_61 dim 1 : vector<1x128xf32>, i32 -> vector<1x128xf32>
    %81 = arith.addf %79, %80 : vector<1x128xf32>
    %cst_62 = arith.constant 0.001953125 : f32
    %82 = vector.broadcast %cst_62 : f32 to vector<1x128xf32>
    %83 = arith.mulf %81, %82 : vector<1x128xf32>
    %84 = vector.broadcast %83 : vector<1x128xf32> to vector<32x128xf32>
    %85 = arith.subf %71, %84 : vector<32x128xf32>
    %86 = arith.mulf %85, %85 : vector<32x128xf32>
    %cst_63 = arith.constant dense<0.000000e+00> : vector<128xf32>
    %87 = vector.multi_reduction <add>, %86, %cst_63 [0] : vector<32x128xf32> to vector<128xf32>
    %88 = vector.shape_cast %87 : vector<128xf32> to vector<1x128xf32>
    %c8_i32_64 = arith.constant 8 : i32
    %89 = tpu.dynamic_rotate %88 by %c8_i32_64 dim 1 : vector<1x128xf32>, i32 -> vector<1x128xf32>
    %90 = arith.addf %88, %89 : vector<1x128xf32>
    %c16_i32_65 = arith.constant 16 : i32
    %91 = tpu.dynamic_rotate %90 by %c16_i32_65 dim 1 : vector<1x128xf32>, i32 -> vector<1x128xf32>
    %92 = arith.addf %90, %91 : vector<1x128xf32>
    %c32_i32_66 = arith.constant 32 : i32
    %93 = tpu.dynamic_rotate %92 by %c32_i32_66 dim 1 : vector<1x128xf32>, i32 -> vector<1x128xf32>
    %94 = arith.addf %92, %93 : vector<1x128xf32>
    %c64_i32_67 = arith.constant 64 : i32
    %95 = tpu.dynamic_rotate %94 by %c64_i32_67 dim 1 : vector<1x128xf32>, i32 -> vector<1x128xf32>
    %96 = arith.addf %94, %95 : vector<1x128xf32>
    %cst_68 = arith.constant 0.001953125 : f32
    %97 = vector.broadcast %cst_68 : f32 to vector<1x128xf32>
    %98 = arith.mulf %96, %97 : vector<1x128xf32>
    %cst_69 = arith.constant 9.99999974E-6 : f32
    %99 = vector.broadcast %cst_69 : f32 to vector<1x128xf32>
    %100 = arith.addf %98, %99 : vector<1x128xf32>
    %101 = math.rsqrt %100 : vector<1x128xf32>
    %102 = arith.mulf %68, %101 : vector<1x128xf32>
    %103 = vector.broadcast %102 : vector<1x128xf32> to vector<32x128xf32>
    %104 = arith.mulf %85, %103 : vector<32x128xf32>
    %105 = vector.broadcast %69 : vector<1x128xf32> to vector<32x128xf32>
    %106 = arith.addf %104, %105 : vector<32x128xf32>
    %107 = vector.shape_cast %106 : vector<32x128xf32> to vector<2x16x128xf32>
    %c0_70 = arith.constant 0 : index
    %c8_71 = arith.constant 8 : index
    %c0_72 = arith.constant 0 : index
    %108 = vector.load %arg16[%c0_70, %c8_71, %c0_72] : memref<2x25x128xf32, #tpu.memory_space<vmem>>, vector<2x16x128xf32>
    tpu.vector_store %arg16[%c0_70, %c8_71, %c0_72], %107 {strides = array<i32>} : memref<2x25x128xf32, #tpu.memory_space<vmem>>, vector<2x16x128xf32>,
    %c0_73 = arith.constant 0 : index
    %c7_74 = arith.constant 7 : index
    %c0_75 = arith.constant 0 : index
    %109 = vector.load %arg16[%c0_73, %c7_74, %c0_75] : memref<2x25x128xf32, #tpu.memory_space<vmem>>, vector<2x16x128xf32>
    %c0_76 = arith.constant 0 : index
    %c8_77 = arith.constant 8 : index
    %c0_78 = arith.constant 0 : index
    %110 = vector.load %arg16[%c0_76, %c8_77, %c0_78] : memref<2x25x128xf32, #tpu.memory_space<vmem>>, vector<2x16x128xf32>
    %c0_79 = arith.constant 0 : index
    %c9_80 = arith.constant 9 : index
    %c0_81 = arith.constant 0 : index
    %111 = vector.load %arg16[%c0_79, %c9_80, %c0_81] : memref<2x25x128xf32, #tpu.memory_space<vmem>>, vector<2x16x128xf32>
    %112 = tpu.concatenate %109, %110, %111 in 2 : vector<2x16x128xf32>, vector<2x16x128xf32>, vector<2x16x128xf32> -> vector<2x16x384xf32>
    %113 = vector.shape_cast %112 : vector<2x16x384xf32> to vector<32x384xf32>
    %c0_82 = arith.constant 0 : index
    %c0_83 = arith.constant 0 : index
    %114 = vector.load %arg9[%c0_82, %c0_83] : memref<384x128xf32, #tpu.memory_space<vmem>>, vector<384x128xf32>
    %cst_84 = arith.constant dense<0.000000e+00> : vector<32x128xf32>
    %115 = tpu.matmul %113, %114, %cst_84 {dimension_numbers = #tpu.dot_dimension_numbers<[1], [0], [0], [1], [0, 0, 1, 1], [], []>} : vector<32x384xf32>, vector<384x128xf32>, vector<32x128xf32> -> vector<32x128xf32>
    %c0_85 = arith.constant 0 : index
    %c0_86 = arith.constant 0 : index
    %116 = vector.load %arg10[%c0_85, %c0_86] : memref<1x128xf32, #tpu.memory_space<vmem>>, vector<1x128xf32>
    %117 = vector.broadcast %116 : vector<1x128xf32> to vector<32x128xf32>
    %118 = arith.addf %115, %117 : vector<32x128xf32>
    %c0_87 = arith.constant 0 : index
    %c0_88 = arith.constant 0 : index
    %119 = vector.load %arg11[%c0_87, %c0_88] : memref<1x128xf32, #tpu.memory_space<vmem>>, vector<1x128xf32>
    %c0_89 = arith.constant 0 : index
    %c0_90 = arith.constant 0 : index
    %120 = vector.load %arg12[%c0_89, %c0_90] : memref<1x128xf32, #tpu.memory_space<vmem>>, vector<1x128xf32>
    %cst_91 = arith.constant 0.000000e+00 : f32
    %121 = vector.broadcast %cst_91 : f32 to vector<32x128xf32>
    %122 = arith.maximumf %118, %121 : vector<32x128xf32>
    %cst_92 = arith.constant dense<0.000000e+00> : vector<128xf32>
    %123 = vector.multi_reduction <add>, %122, %cst_92 [0] : vector<32x128xf32> to vector<128xf32>
    %124 = vector.shape_cast %123 : vector<128xf32> to vector<1x128xf32>
    %c8_i32_93 = arith.constant 8 : i32
    %125 = tpu.dynamic_rotate %124 by %c8_i32_93 dim 1 : vector<1x128xf32>, i32 -> vector<1x128xf32>
    %126 = arith.addf %124, %125 : vector<1x128xf32>
    %c16_i32_94 = arith.constant 16 : i32
    %127 = tpu.dynamic_rotate %126 by %c16_i32_94 dim 1 : vector<1x128xf32>, i32 -> vector<1x128xf32>
    %128 = arith.addf %126, %127 : vector<1x128xf32>
    %c32_i32_95 = arith.constant 32 : i32
    %129 = tpu.dynamic_rotate %128 by %c32_i32_95 dim 1 : vector<1x128xf32>, i32 -> vector<1x128xf32>
    %130 = arith.addf %128, %129 : vector<1x128xf32>
    %c64_i32_96 = arith.constant 64 : i32
    %131 = tpu.dynamic_rotate %130 by %c64_i32_96 dim 1 : vector<1x128xf32>, i32 -> vector<1x128xf32>
    %132 = arith.addf %130, %131 : vector<1x128xf32>
    %cst_97 = arith.constant 0.001953125 : f32
    %133 = vector.broadcast %cst_97 : f32 to vector<1x128xf32>
    %134 = arith.mulf %132, %133 : vector<1x128xf32>
    %135 = vector.broadcast %134 : vector<1x128xf32> to vector<32x128xf32>
    %136 = arith.subf %122, %135 : vector<32x128xf32>
    %137 = arith.mulf %136, %136 : vector<32x128xf32>
    %cst_98 = arith.constant dense<0.000000e+00> : vector<128xf32>
    %138 = vector.multi_reduction <add>, %137, %cst_98 [0] : vector<32x128xf32> to vector<128xf32>
    %139 = vector.shape_cast %138 : vector<128xf32> to vector<1x128xf32>
    %c8_i32_99 = arith.constant 8 : i32
    %140 = tpu.dynamic_rotate %139 by %c8_i32_99 dim 1 : vector<1x128xf32>, i32 -> vector<1x128xf32>
    %141 = arith.addf %139, %140 : vector<1x128xf32>
    %c16_i32_100 = arith.constant 16 : i32
    %142 = tpu.dynamic_rotate %141 by %c16_i32_100 dim 1 : vector<1x128xf32>, i32 -> vector<1x128xf32>
    %143 = arith.addf %141, %142 : vector<1x128xf32>
    %c32_i32_101 = arith.constant 32 : i32
    %144 = tpu.dynamic_rotate %143 by %c32_i32_101 dim 1 : vector<1x128xf32>, i32 -> vector<1x128xf32>
    %145 = arith.addf %143, %144 : vector<1x128xf32>
    %c64_i32_102 = arith.constant 64 : i32
    %146 = tpu.dynamic_rotate %145 by %c64_i32_102 dim 1 : vector<1x128xf32>, i32 -> vector<1x128xf32>
    %147 = arith.addf %145, %146 : vector<1x128xf32>
    %cst_103 = arith.constant 0.001953125 : f32
    %148 = vector.broadcast %cst_103 : f32 to vector<1x128xf32>
    %149 = arith.mulf %147, %148 : vector<1x128xf32>
    %cst_104 = arith.constant 9.99999974E-6 : f32
    %150 = vector.broadcast %cst_104 : f32 to vector<1x128xf32>
    %151 = arith.addf %149, %150 : vector<1x128xf32>
    %152 = math.rsqrt %151 : vector<1x128xf32>
    %153 = arith.mulf %119, %152 : vector<1x128xf32>
    %154 = vector.broadcast %153 : vector<1x128xf32> to vector<32x128xf32>
    %155 = arith.mulf %136, %154 : vector<32x128xf32>
    %156 = vector.broadcast %120 : vector<1x128xf32> to vector<32x128xf32>
    %157 = arith.addf %155, %156 : vector<32x128xf32>
    %c0_105 = arith.constant 0 : index
    %c0_106 = arith.constant 0 : index
    %158 = vector.load %arg13[%c0_105, %c0_106] : memref<128x128xf32, #tpu.memory_space<vmem>>, vector<128x128xf32>
    %cst_107 = arith.constant dense<0.000000e+00> : vector<32x128xf32>
    %159 = tpu.matmul %4, %158, %cst_107 {dimension_numbers = #tpu.dot_dimension_numbers<[1], [0], [0], [1], [0, 0, 1, 1], [], []>} : vector<32x128xf32>, vector<128x128xf32>, vector<32x128xf32> -> vector<32x128xf32>
    %c0_108 = arith.constant 0 : index
    %c0_109 = arith.constant 0 : index
    %160 = vector.load %arg14[%c0_108, %c0_109] : memref<1x128xf32, #tpu.memory_space<vmem>>, vector<1x128xf32>
    %161 = vector.broadcast %160 : vector<1x128xf32> to vector<32x128xf32>
    %162 = arith.addf %159, %161 : vector<32x128xf32>
    %163 = arith.addf %162, %157 : vector<32x128xf32>
    %c0_110 = arith.constant 0 : index
    %c0_111 = arith.constant 0 : index
    %164 = vector.load %arg15[%c0_110, %c0_111] : memref<32x128xf32, #tpu.memory_space<vmem>>, vector<32x128xf32>
    tpu.vector_store %arg15[%c0_110, %c0_111], %163 {strides = array<i32>} : memref<32x128xf32, #tpu.memory_space<vmem>>, vector<32x128xf32>,
    return
  }
}

</mosaic_0001>

<bundles_post_ra>
// kernel: tpu_custom_call.1
= control target key start
LH: loop header
LB: loop body
LE: loop exit
PB: predicated region body
PF: predicated region fallthrough
CT: control target
= control target key end

     0   :  { %20 = vsyncpa [#allocation4], 0  ;;  %s2071_s0 = inlined_call_operand.hbm [shape: f32[2,16,128], index: 0, kind: input, shape index: {}]   ;;  %s2072_s1 = inlined_call_operand.hbm [shape: f32[384,128], index: 1, kind: input, shape index: {}]   ;;  %s2073_s2 = inlined_call_operand.vmem [shape: f32[1,128], index: 2, kind: input, shape index: {}]   ;;  %s2074_s3 = inlined_call_operand.vmem [shape: f32[1,128], index: 3, kind: input, shape index: {}]   ;;  %s2075_s4 = inlined_call_operand.vmem [shape: f32[1,128], index: 4, kind: input, shape index: {}]   ;;  %s2076_s5 = inlined_call_operand.hbm [shape: f32[384,128], index: 5, kind: input, shape index: {}]   ;;  %s2077_s6 = inlined_call_operand.vmem [shape: f32[1,128], index: 6, kind: input, shape index: {}]   ;;  %s2078_s7 = inlined_call_operand.vmem [shape: f32[1,128], index: 7, kind: input, shape index: {}]   ;;  %s2079_s8 = inlined_call_operand.vmem [shape: f32[1,128], index: 8, kind: input, shape index: {}]   ;;  %s2080_s9 = inlined_call_operand.hbm [shape: f32[384,128], index: 9, kind: input, shape index: {}]   ;;  %s2081_s10 = inlined_call_operand.vmem [shape: f32[1,128], index: 10, kind: input, shape index: {}]   ;;  %s2082_s11 = inlined_call_operand.vmem [shape: f32[1,128], index: 11, kind: input, shape index: {}]   ;;  %s2083_s12 = inlined_call_operand.vmem [shape: f32[1,128], index: 12, kind: input, shape index: {}]   ;;  %s2084_s13 = inlined_call_operand.hbm [shape: f32[128,128], index: 13, kind: input, shape index: {}]   ;;  %s2085_s14 = inlined_call_operand.vmem [shape: f32[1,128], index: 14, kind: input, shape index: {}]   ;;  %s2086_s15 = inlined_call_operand.hbm [shape: f32[32,128], index: 15, kind: output, shape index: {}]  }
   0x1   :  { %21 = vsyncpa [#allocation7], 0 }
   0x2   :  { %22 = vsyncpa [#allocation10], 0 }
   0x3   :  { %23 = vsyncpa [#allocation5], 0  ;;  %s1789_s18 = smov [#allocation6]   ;;  %s1790_s20 = smov [#allocation9]  }
   0x4   :  { %s41_s19 = sshll.u32 %s1789_s18, 4  ;;  %s77_s21 = sshll.u32 %s1790_s20, 4  ;;  %s42_s19 = int_to_ptr.vmem [resolvable:$true] %s41_s19  ;;  %s78_s21 = int_to_ptr.vmem [resolvable:$true] %s77_s21 }
   0x5   :  { %s1669_s22 = scalar_lea.vmem %s42_s19, 6144  ;;  %p1674_p1 = scmp.lt.s32.totalorder %s42_s19, %s42_s19 }
   0x6   :  { %p1670_p0 = scmp.ne.s32.totalorder %s42_s19, %s1669_s22  ;;  %p1675_p2 = scmp.lt.s32.totalorder %s1669_s22, %s1669_s22 }
   0x8   :  { %p1676_p3 = por %p1675_p2, %p1674_p1 }
   0xa   :  { %p1677_p4 = pnand %p1676_p3, %p1670_p0 }
   0xc   :  { %1680 = shalt.err (!%p1677_p4)
}
   0xd   :  { %s1791_s23 = smov 128   ;;  %s1792_s24 = smov 8  }
   0xe   :  { %47 = dma.hbm_to_vmem [thread:$0]  %s2072_s1, 6144, %s42_s19, [#allocation7], %s1791_s23, %s1791_s23, %s1792_s24  }
   0xf   :  { %s1689_s27 = scalar_lea.vmem %s78_s21, 6144  ;;  %p1694_p6 = scmp.lt.s32.totalorder %s78_s21, %s78_s21 }
  0x10   :  { %p1690_p5 = scmp.ne.s32.totalorder %s78_s21, %s1689_s27  ;;  %p1695_p7 = scmp.lt.s32.totalorder %s1689_s27, %s1689_s27 }
  0x12   :  { %p1696_p8 = por %p1695_p7, %p1694_p6 }
  0x14   :  { %p1697_p9 = pnand %p1696_p8, %p1690_p5 }
  0x16   :  { %1700 = shalt.err (!%p1697_p9)
}
  0x17   :  { %83 = dma.hbm_to_vmem [thread:$0]  %s2080_s9, 6144, %s78_s21, [#allocation10], %s1791_s23, %s1791_s23, %s1792_s24  }
  0x18   :  { %s1793_s30 = smov [#allocation3]   ;;  %s1794_s17 = smov [#allocation8]  }
  0x19   :  { %s29_s16 = sshll.u32 %s1793_s30, 4  ;;  %s59_s18 = sshll.u32 %s1794_s17, 4  ;;  %s30_s16 = int_to_ptr.vmem [resolvable:$true] %s29_s16  ;;  %s60_s18 = int_to_ptr.vmem [resolvable:$true] %s59_s18 }
  0x1a   :  { %s1709_s1 = scalar_lea.vmem %s30_s16, 512  ;;  %p1714_p11 = scmp.lt.s32.totalorder %s30_s16, %s30_s16 }
  0x1b   :  { %p1710_p10 = scmp.ne.s32.totalorder %s30_s16, %s1709_s1  ;;  %p1715_p12 = scmp.lt.s32.totalorder %s1709_s1, %s1709_s1 }
  0x1d   :  { %p1716_p13 = por %p1715_p12, %p1714_p11 }
  0x1f   :  { %p1717_p0 = pnand %p1716_p13, %p1710_p10 }
  0x21   :  { %1720 = shalt.err (!%p1717_p0)
}
  0x22   :  { %35 = dma.hbm_to_vmem [thread:$0]  %s2071_s0, 512, %s30_s16, [#allocation4], %s1791_s23, %s1791_s23, %s1792_s24  }
  0x23   :  { %s1729_s9 = scalar_lea.vmem %s60_s18, 6144  ;;  %p1734_p2 = scmp.lt.s32.totalorder %s60_s18, %s60_s18 }
  0x24   :  { %p1730_p1 = scmp.ne.s32.totalorder %s60_s18, %s1729_s9  ;;  %p1735_p3 = scmp.lt.s32.totalorder %s1729_s9, %s1729_s9 }
  0x26   :  { %p1736_p4 = por %p1735_p3, %p1734_p2 }
  0x28   :  { %p1737_p5 = pnand %p1736_p4, %p1730_p1 }
  0x2a   :  { %1740 = shalt.err (!%p1737_p5)
}
  0x2b   :  { %65 = dma.hbm_to_vmem [thread:$0]  %s2076_s5, 6144, %s60_s18, [#allocation7], %s1791_s23, %s1791_s23, %s1792_s24  }
  0x2c   :  { %s1795_s25 = smov [#allocation11]  }
  0x2d   :  { %s95_s26 = sshll.u32 %s1795_s25, 4  ;;  %s96_s26 = int_to_ptr.vmem [resolvable:$true] %s95_s26 }
  0x2e   :  { %s1749_s27 = scalar_lea.vmem %s96_s26, 2048  ;;  %p1754_p7 = scmp.lt.s32.totalorder %s96_s26, %s96_s26 }
  0x2f   :  { %p1750_p6 = scmp.ne.s32.totalorder %s96_s26, %s1749_s27  ;;  %p1755_p8 = scmp.lt.s32.totalorder %s1749_s27, %s1749_s27 }
  0x31   :  { %p1756_p9 = por %p1755_p8, %p1754_p7 }
  0x33   :  { %p1757_p10 = pnand %p1756_p9, %p1750_p6 }
  0x35   :  { %1760 = shalt.err (!%p1757_p10)
}
  0x36   :  { %101 = dma.hbm_to_vmem [thread:$0]  %s2084_s13, 2048, %s96_s26, [#allocation10], %s1791_s23, %s1791_s23, %s1792_s24  }
  0x37   :  { %1781 = dma.done.wait [#allocation4], 512  }
  0x38   :  { %1782 = vsyncadd [#allocation4], 4294966784 }
  0x39   :  { %1783 = dma.done.wait [#allocation7], 12288  }
  0x3a   :  { %1784 = vsyncadd [#allocation7], 4294955008 }
  0x3b   :  { %1785 = dma.done.wait [#allocation10], 8192  }
  0x3c   :  { %1786 = vsyncadd [#allocation10], 4294959104  ;;  %v1796_v0 = vmov 0.0   ;;  %v174_v1 = vld [vmem:[#allocation6 + $0xf8] sm:$0xff]  ;;  %v173_v3 = vld [vmem:[#allocation6 + $0xf0] sm:$0xff]  ;;  %s1798_s29 = smov 32  }
  0x3d   :  { %119 = vst [vmem:[#allocation2 + $0x7] sm:$0x1] %v1796_v0  ;;  %120 = vst [vmem:[#allocation2 + $0x27] sm:$0x1] %v1796_v0  ;;  %v158_v2 = vld [vmem:[#allocation6 + $0x78] sm:$0xff]  ;;  %1247 = vmatprep.subr.mxu0 %v174_v1  ;;  %v157_v4 = vld [vmem:[#allocation6 + $0x70] sm:$0xff] }
  0x3e   :  { %121 = vst [vmem:[#allocation2 + $0x18] sm:$0x1] %v1796_v0  ;;  %122 = vst [vmem:[#allocation2 + $0x38] sm:$0x1] %v1796_v0  ;;  %v190_v5 = vld [vmem:[#allocation6 + $0x178] sm:$0xff]  ;;  %1248 = vmatpush3.msra.mxu0 %v158_v2  ;;  %v172_v6 = vld [vmem:[#allocation6 + $0xe8] sm:$0xff] }
  0x3f   :  { %1459 = vmatprep.subr.mxu1 %v190_v5  ;;  %v189_v7 = vld [vmem:[#allocation6 + $0x170] sm:$0xff]  ;;  %1249 = vmatprep.subr.mxu0 %v173_v3  ;;  %v156_v8 = vld [vmem:[#allocation6 + $0x68] sm:$0xff]  ;;  %v171_v10 = vld [vmem:[#allocation6 + $0xe0] sm:$0xff]  ;;  %s1799_s30 = smov 64  }
  0x40   :  { %1460 = vmatpush3.msra.mxu1 %v190_v5  ;;  %v188_v9 = vld [vmem:[#allocation6 + $0x168] sm:$0xff]  ;;  %1250 = vmatpush3.msra.mxu0 %v157_v4  ;;  %v155_v11 = vld [vmem:[#allocation6 + $0x60] sm:$0xff]  ;;  %v170_v13 = vld [vmem:[#allocation6 + $0xd8] sm:$0xff] }
  0x41   :  { %1461 = vmatprep.subr.mxu1 %v189_v7  ;;  %1251 = vmatprep.subr.mxu0 %v172_v6  ;;  %v187_v12 = vld [vmem:[#allocation6 + $0x160] sm:$0xff]  ;;  %v154_v14 = vld [vmem:[#allocation6 + $0x58] sm:$0xff]  ;;  %v169_v16 = vld [vmem:[#allocation6 + $0xd0] sm:$0xff] }
  0x42   :  { %1462 = vmatpush3.msra.mxu1 %v189_v7  ;;  %1252 = vmatpush3.msra.mxu0 %v156_v8  ;;  %v186_v15 = vld [vmem:[#allocation6 + $0x158] sm:$0xff]  ;;  %v153_v17 = vld [vmem:[#allocation6 + $0x50] sm:$0xff]  ;;  %v168_v19 = vld [vmem:[#allocation6 + $0xc8] sm:$0xff] }
  0x43   :  { %1463 = vmatprep.subr.mxu1 %v188_v9  ;;  %1253 = vmatprep.subr.mxu0 %v171_v10  ;;  %v185_v18 = vld [vmem:[#allocation6 + $0x150] sm:$0xff]  ;;  %v152_v20 = vld [vmem:[#allocation6 + $0x48] sm:$0xff]  ;;  %v167_v22 = vld [vmem:[#allocation6 + $0xc0] sm:$0xff] }
  0x44   :  { %1464 = vmatpush3.msra.mxu1 %v188_v9  ;;  %1254 = vmatpush3.msra.mxu0 %v155_v11  ;;  %v184_v21 = vld [vmem:[#allocation6 + $0x148] sm:$0xff]  ;;  %v151_v23 = vld [vmem:[#allocation6 + $0x40] sm:$0xff]  ;;  %v166_v25 = vld [vmem:[#allocation6 + $0xb8] sm:$0xff] }
  0x45   :  { %1465 = vmatprep.subr.mxu1 %v187_v12  ;;  %1255 = vmatprep.subr.mxu0 %v170_v13  ;;  %v183_v24 = vld [vmem:[#allocation6 + $0x140] sm:$0xff]  ;;  %v150_v26 = vld [vmem:[#allocation6 + $0x38] sm:$0xff]  ;;  %v165_v29 = vld [vmem:[#allocation6 + $0xb0] sm:$0xff] }
  0x46   :  { %1466 = vmatpush3.msra.mxu1 %v187_v12  ;;  %1256 = vmatpush3.msra.mxu0 %v154_v14  ;;  %v182_v27 = vld [vmem:[#allocation6 + $0x138] sm:$0xff]  ;;  %v1911_v28 = vld [vmem:[#allocation3] sm:$0xff]  ;;  %v1914_v30 = vld [vmem:[#allocation3 + $0x8] sm:$0xff] }
  0x47   :  { %1467 = vmatprep.subr.mxu1 %v186_v15  ;;  %1257 = vmatprep.subr.mxu0 %v169_v16  ;;  %127 = vst [vmem:[#allocation2 + $0x8] sm:$0xff] %v1911_v28  ;;  %v1916_v31 = vld [vmem:[#allocation3 + $0x10] sm:$0xff]  ;;  %128 = vst [vmem:[#allocation2 + $0x10] sm:$0xff] %v1914_v30  ;;  %v1920_v34 = vld [vmem:[#allocation3 + $0x18] sm:$0xff] }
  0x48   :  { %1468 = vmatpush3.msra.mxu1 %v186_v15  ;;  %1258 = vmatpush3.msra.mxu0 %v153_v17  ;;  %v149_v32 = vld [vmem:[#allocation6 + $0x30] sm:$0xff]  ;;  %129 = vst [vmem:[#allocation2 + $0x28] sm:$0xff] %v1916_v31  ;;  %v164_v35 = vld [vmem:[#allocation6 + $0xa8] sm:$0xff]  ;;  %130 = vst [vmem:[#allocation2 + $0x30] sm:$0xff] %v1920_v34 }
  0x49   :  { %1469 = vmatprep.subr.mxu1 %v185_v18  ;;  %1259 = vmatprep.subr.mxu0 %v168_v19  ;;  %v181_v33 = vld [vmem:[#allocation6 + $0x130] sm:$0xff]  ;;  %v148_v36 = vld [vmem:[#allocation6 + $0x28] sm:$0xff]  ;;  %v163_v38 = vld [vmem:[#allocation6 + $0xa0] sm:$0xff] }
  0x4a   :  { %1470 = vmatpush3.msra.mxu1 %v185_v18  ;;  %1260 = vmatpush3.msra.mxu0 %v152_v20  ;;  %v180_v37 = vld [vmem:[#allocation6 + $0x128] sm:$0xff]  ;;  %v147_v39 = vld [vmem:[#allocation6 + $0x20] sm:$0xff]  ;;  %v162_v41 = vld [vmem:[#allocation6 + $0x98] sm:$0xff] }
  0x4b   :  { %1471 = vmatprep.subr.mxu1 %v184_v21  ;;  %1261 = vmatprep.subr.mxu0 %v167_v22  ;;  %v179_v40 = vld [vmem:[#allocation6 + $0x120] sm:$0xff]  ;;  %v146_v42 = vld [vmem:[#allocation6 + $0x18] sm:$0xff]  ;;  %v161_v44 = vld [vmem:[#allocation6 + $0x90] sm:$0xff] }
  0x4c   :  { %1472 = vmatpush3.msra.mxu1 %v184_v21  ;;  %1262 = vmatpush3.msra.mxu0 %v151_v23  ;;  %v178_v43 = vld [vmem:[#allocation6 + $0x118] sm:$0xff]  ;;  %v145_v45 = vld [vmem:[#allocation6 + $0x10] sm:$0xff]  ;;  %v160_v47 = vld [vmem:[#allocation6 + $0x88] sm:$0xff] }
  0x4d   :  { %1473 = vmatprep.subr.mxu1 %v183_v24  ;;  %1263 = vmatprep.subr.mxu0 %v166_v25  ;;  %v177_v46 = vld [vmem:[#allocation6 + $0x110] sm:$0xff]  ;;  %v144_v48 = vld [vmem:[#allocation6 + $0x8] sm:$0xff]  ;;  %v159_v49 = vld [vmem:[#allocation6 + $0x80] sm:$0xff] }
  0x4e   :  { %1474 = vmatpush3.msra.mxu1 %v183_v24  ;;  %1264 = vmatpush3.msra.mxu0 %v150_v26  ;;  %v176_v50 = vld [vmem:[#allocation6 + $0x108] sm:$0xff]  ;;  %v143_v51 = vld [vmem:[#allocation6] sm:$0xff]  ;;  %v140_v55 = vld [vmem:[#allocation2 + $0x11] sm:$0xff] }
  0x4f   :  { %1475 = vmatprep.subr.mxu1 %v182_v27  ;;  %1265 = vmatprep.subr.mxu0 %v165_v29  ;;  %v131_v52 = vld [vmem:[#allocation2 + $0x7] sm:$0xff]  ;;  %v132_v56 = vld [vmem:[#allocation2 + $0xf] sm:$0xff]  ;;  %v1240_v2 = vld [vmem:[%s2073_s2] ss:$0 sm:$0xff]  ;;  %s1797_s2 = smov 16  }
  0x50   :  { %1476 = vmatpush3.msra.mxu1 %v182_v27  ;;  %1266 = vmatpush3.msra.mxu0 %v149_v32  ;;  %v175_v53 = vld [vmem:[#allocation6 + $0x100] sm:$0xff]  ;;  %v139_v54 = vld [vmem:[#allocation2 + $0x9] sm:$0xff]  ;;  %v142_v58 = vld [vmem:[#allocation2 + $0x31] sm:$0xff] }
  0x51   :  { %1477 = vmatprep.subr.mxu1 %v181_v33  ;;  %1267 = vmatprep.subr.mxu0 %v164_v35  ;;  %v141_v57 = vld [vmem:[#allocation2 + $0x29] sm:$0xff] }
  0x52   :  { %1478 = vmatpush3.msra.mxu1 %v181_v33  ;;  %1268 = vmatpush3.msra.mxu0 %v148_v36  ;;  %v133_v59 = vld [vmem:[#allocation2 + $0x27] sm:$0xff]  ;;  %v134_v60 = vld [vmem:[#allocation2 + $0x2f] sm:$0xff] }
  0x53   :  { %1479 = vmatprep.subr.mxu1 %v180_v37  ;;  %1269 = vmatprep.subr.mxu0 %v163_v38 }
  0x54   :  { %1480 = vmatpush3.msra.mxu1 %v180_v37  ;;  %1270 = vmatpush3.msra.mxu0 %v147_v39 }
  0x55   :  { %1481 = vmatprep.subr.mxu1 %v179_v40  ;;  %1271 = vmatprep.subr.mxu0 %v162_v41 }
  0x56   :  { %1482 = vmatpush3.msra.mxu1 %v179_v40  ;;  %1272 = vmatpush3.msra.mxu0 %v146_v42 }
  0x57   :  { %1483 = vmatprep.subr.mxu1 %v178_v43  ;;  %1273 = vmatprep.subr.mxu0 %v161_v44 }
  0x58   :  { %1484 = vmatpush3.msra.mxu1 %v178_v43  ;;  %1274 = vmatpush3.msra.mxu0 %v145_v45  ;;  %v396_v45 = vlaneseq }
  0x59   :  { %1485 = vmatprep.subr.mxu1 %v177_v46  ;;  %1275 = vmatprep.subr.mxu0 %v160_v47 }
  0x5a   :  { %262 = vmatprep.mubr.f32.mxu0 %v1911_v28  ;;  %1276 = vmatpush3.msra.mxu0 %v144_v48 }
  0x5b   :  { %1486 = vmatpush3.msra.mxu1 %v177_v46  ;;  %1277 = vmatprep.subr.mxu0 %v159_v49  ;;  %v397_v46 = vshrl.u32 %v396_v45, 7  ;;  %v490_v45 = vld [vmem:[#allocation8 + $0xa8] sm:$0xff] }
  0x5c   :  { %1487 = vmatprep.subr.mxu1 %v176_v50  ;;  %1278 = vmatpush3.msra.mxu0 %v143_v51 }
  0x5d   :  { %1488 = vmatpush3.msra.mxu1 %v176_v50  ;;  %263 = vmatmul.mubr.f32.vlgmr.msra.gmra.mxu0 %v131_v52  ;;  %v1934_v48 = vsub.s32 0, %v397_v46  ;;  %v506_v46 = vld [vmem:[#allocation8 + $0x128] sm:$0xff] }
  0x5e   :  { %1489 = vmatprep.subr.mxu1 %v175_v53  ;;  %267 = vmatprep.mubr.f32.mxu0 %v1914_v30 }
  0x5f   :  { %1490 = vmatpush3.msra.mxu1 %v175_v53  ;;  %1491 = vmatprep.mubr.f32.mxu1 %v139_v54 }
  0x60   :  { %1492 = vmatmul.mubr.f32.vlgmr.msra.gmra.mxu1 %v140_v55 }
  0x61   :  { %268 = vmatmul.mubr.f32.gmra.mxu0 %v132_v56  ;;  %1494 = vmatprep.mubr.f32.mxu1 %v141_v57 }
  0x62   :  { %272 = vmatprep.mubr.f32.mxu0 %v1916_v31 }
  0x64   :  { %1495 = vmatmul.mubr.f32.gmra.mxu1 %v142_v58 }
  0x65   :  { %273 = vmatmul.mubr.f32.gmra.mxu0 %v133_v59 }
  0x66   :  { %277 = vmatprep.mubr.f32.mxu0 %v1920_v34 }
  0x69   :  { %278 = vmatmul.mubr.f32.gmra.mxu0 %v134_v60 }
 0x11d   :  { %v1279_v61 = vpop.f32.mrf.mxu0 }
 0x11f   :  { %v1280_v62 = vpop.f32.mrf.mxu0 }
 0x120   :  { %v1493_v63 = vpop.f32.mrf.mxu1  ;;  %v1281_v1 = vadd.f32 %v1280_v62, %v1279_v61 }
 0x121   :  { %v1282_v0 = vpop.f32.mrf.mxu0 }
 0x122   :  { %v349_v4 = vpop.f32.mrf.mxu1  ;;  %v265_v9 = vadd.f32 %v1281_v1, %v1240_v2 }
 0x123   :  { %v1283_v3 = vpop.f32.mrf.mxu0 }
 0x124   :  { %v1284_v5 = vadd.f32 %v1283_v3, %v1282_v0  ;;  %v1496_v7 = vpop.f32.mrf.mxu1  ;;  %v350_v15 = vadd.f32 %v349_v4, %v265_v9  ;;  %v500_v9 = vld [vmem:[#allocation8 + $0xf8] sm:$0xff] }
 0x125   :  { %v1285_v6 = vpop.f32.mrf.mxu0  ;;  %1311 = vmatprep.subr.mxu0 %v500_v9 }
 0x126   :  { %v270_v8 = vadd.f32 %v1284_v5, %v1240_v2  ;;  %v359_v14 = vpop.f32.mrf.mxu1  ;;  %v370_v21 = vmax.f32 %v350_v15, 0.0  ;;  %v498_v15 = vld [vmem:[#allocation8 + $0xe8] sm:$0xff] }
 0x127   :  { %v1286_v10 = vpop.f32.mrf.mxu0 }
 0x128   :  { %v355_v11 = vadd.f32 %v1493_v63, %v270_v8  ;;  %v1287_v12 = vadd.f32 %v1286_v10, %v1285_v6  ;;  %v516_v10 = vld [vmem:[#allocation8 + $0x178] sm:$0xff] }
 0x129   :  { %v1288_v13 = vpop.f32.mrf.mxu0  ;;  %1497 = vmatprep.subr.mxu1 %v516_v10 }
 0x12a   :  { %v275_v16 = vadd.f32 %v1287_v12, %v1240_v2  ;;  %v371_v18 = vmax.f32 %v355_v11, 0.0  ;;  %v484_v11 = vld [vmem:[#allocation8 + $0x78] sm:$0xff]  ;;  %v499_v12 = vld [vmem:[#allocation8 + $0xf0] sm:$0xff]  ;;  %1498 = vmatpush3.msra.mxu1 %v516_v10 }
 0x12b   :  { %v1289_v17 = vpop.f32.mrf.mxu0  ;;  %1312 = vmatpush3.msra.mxu0 %v484_v11 }
 0x12c   :  { %v1290_v19 = vadd.f32 %v1289_v17, %v1288_v13  ;;  %v360_v20 = vadd.f32 %v359_v14, %v275_v16  ;;  %v374_v24 = vadd.f32 %v371_v18, %v370_v21  ;;  %1313 = vmatprep.subr.mxu0 %v499_v12  ;;  %v515_v13 = vld [vmem:[#allocation8 + $0x170] sm:$0xff]  ;;  %v514_v16 = vld [vmem:[#allocation8 + $0x168] sm:$0xff]  ;;  %v1241_v12 = vld [vmem:[%s2075_s4] ss:$0 sm:$0xff] }
 0x12d   :  { %v483_v14 = vld [vmem:[#allocation8 + $0x70] sm:$0xff]  ;;  %1499 = vmatprep.subr.mxu1 %v515_v13  ;;  %v482_v17 = vld [vmem:[#allocation8 + $0x68] sm:$0xff] }
 0x12e   :  { %v280_v22 = vadd.f32 %v1290_v19, %v1240_v2  ;;  %v372_v23 = vmax.f32 %v360_v20, 0.0  ;;  %1314 = vmatpush3.msra.mxu0 %v483_v14  ;;  %1500 = vmatpush3.msra.mxu1 %v515_v13  ;;  %v513_v20 = vld [vmem:[#allocation8 + $0x160] sm:$0xff] }
 0x12f   :  { %1315 = vmatprep.subr.mxu0 %v498_v15  ;;  %1501 = vmatprep.subr.mxu1 %v514_v16 }
 0x130   :  { %v365_v25 = vadd.f32 %v1496_v7, %v280_v22  ;;  %v375_v27 = vadd.f32 %v374_v24, %v372_v23  ;;  %1316 = vmatpush3.msra.mxu0 %v482_v17  ;;  %1502 = vmatpush3.msra.mxu1 %v514_v16  ;;  %v512_v24 = vld [vmem:[#allocation8 + $0x158] sm:$0xff] }
 0x131   :  { %1503 = vmatprep.subr.mxu1 %v513_v20 }
 0x132   :  { %v373_v26 = vmax.f32 %v365_v25, 0.0  ;;  %1504 = vmatpush3.msra.mxu1 %v513_v20  ;;  %v480_v25 = vld [vmem:[#allocation8 + $0x58] sm:$0xff] }
 0x133   :  { %1505 = vmatprep.subr.mxu1 %v512_v24 }
 0x134   :  { %v376_v29 = vadd.f32 %v375_v27, %v373_v26  ;;  %1506 = vmatpush3.msra.mxu1 %v512_v24  ;;  %v511_v27 = vld [vmem:[#allocation8 + $0x150] sm:$0xff] }
 0x135   :  { %1507 = vmatprep.subr.mxu1 %v511_v27 }
 0x136   :  { %v377_v32 = vrot.slane %v376_v29, 4  ;;  %1508 = vmatpush3.msra.mxu1 %v511_v27 }
 0x138   :  { %v378_v33 = vadd.f32 %v377_v32, %v376_v29  ;;  %v479_v29 = vld [vmem:[#allocation8 + $0x50] sm:$0xff]  ;;  %v494_v32 = vld [vmem:[#allocation8 + $0xc8] sm:$0xff] }
 0x13a   :  { %v379_v35 = vrot.slane %v378_v33, 2 }
 0x13c   :  { %v380_v36 = vadd.f32 %v379_v35, %v378_v33  ;;  %v510_v33 = vld [vmem:[#allocation8 + $0x148] sm:$0xff] }
 0x13d   :  { %v478_v35 = vld [vmem:[#allocation8 + $0x48] sm:$0xff]  ;;  %1509 = vmatprep.subr.mxu1 %v510_v33 }
 0x13e   :  { %v381_v37 = vrot.slane %v380_v36, 1  ;;  %1510 = vmatpush3.msra.mxu1 %v510_v33  ;;  %v1242_v33 = vld [vmem:[%s2077_s6] ss:$0 sm:$0xff] }
 0x140   :  { %v382_v38 = vadd.f32 %v381_v37, %v380_v36  ;;  %v493_v36 = vld [vmem:[#allocation8 + $0xc0] sm:$0xff] }
 0x141   :  { %v509_v37 = vld [vmem:[#allocation8 + $0x140] sm:$0xff] }
 0x142   :  { %383 = vrot.lane.b32.xlu0 %v382_v38, %s1792_s24  ;;  %1511 = vmatprep.subr.mxu1 %v509_v37 }
 0x143   :  { %1512 = vmatpush3.msra.mxu1 %v509_v37 }
 0x1b4   :  { %v384_v39 = vpop.permute.xlu0 %383 }
 0x1b5   :  { %v385_v40 = vadd.f32 %v384_v39, %v382_v38  ;;  %v477_v38 = vld [vmem:[#allocation8 + $0x40] sm:$0xff]  ;;  %v492_v39 = vld [vmem:[#allocation8 + $0xb8] sm:$0xff] }
 0x1b7   :  { %386 = vrot.lane.b32.xlu0 %v385_v40, %s1797_s2 }
 0x229   :  { %v387_v41 = vpop.permute.xlu0 %386 }
 0x22a   :  { %v388_v42 = vadd.f32 %v387_v41, %v385_v40  ;;  %v508_v40 = vld [vmem:[#allocation8 + $0x138] sm:$0xff] }
 0x22b   :  { %v476_v41 = vld [vmem:[#allocation8 + $0x38] sm:$0xff]  ;;  %1513 = vmatprep.subr.mxu1 %v508_v40 }
 0x22c   :  { %389 = vrot.lane.b32.xlu1 %v388_v42, %s1798_s29  ;;  %1514 = vmatpush3.msra.mxu1 %v508_v40 }
 0x29e   :  { %v390_v43 = vpop.permute.xlu1 %389 }
 0x29f   :  { %v391_v44 = vadd.f32 %v390_v43, %v388_v42  ;;  %v491_v42 = vld [vmem:[#allocation8 + $0xb0] sm:$0xff] }
 0x2a0   :  { %v507_v43 = vld [vmem:[#allocation8 + $0x130] sm:$0xff] }
 0x2a1   :  { %392 = vrot.lane.b32.xlu1 %v391_v44, %s1799_s30  ;;  %1515 = vmatprep.subr.mxu1 %v507_v43 }
 0x2a2   :  { %1516 = vmatpush3.msra.mxu1 %v507_v43 }
 0x2a3   :  { %1517 = vmatprep.subr.mxu1 %v506_v46 }
 0x2a4   :  { %1518 = vmatpush3.msra.mxu1 %v506_v46 }
 0x313   :  { %v393_v47 = vpop.permute.xlu1 %392 }
 0x314   :  { %v394_v49 = vadd.f32 %v393_v47, %v391_v44  ;;  %v475_v44 = vld [vmem:[#allocation8 + $0x30] sm:$0xff]  ;;  %v474_v47 = vld [vmem:[#allocation8 + $0x28] sm:$0xff] }
 0x316   :  { %v395_v50 = vmul.f32 0.001953125, %v394_v49  ;;  %v489_v49 = vld [vmem:[#allocation8 + $0xa0] sm:$0xff] }
 0x318   :  { %v399_v51 = vrot.slane %v395_v50, %v1934_v48  ;;  %v505_v50 = vld [vmem:[#allocation8 + $0x120] sm:$0xff] }
 0x319   :  { %1519 = vmatprep.subr.mxu1 %v505_v50 }
 0x31a   :  { %v1937_v52 = vsub.f32 %v370_v21, %v399_v51  ;;  %v1939_v53 = vsub.f32 %v371_v18, %v399_v51  ;;  %v1941_v54 = vsub.f32 %v372_v23, %v399_v51  ;;  %v1943_v55 = vsub.f32 %v373_v26, %v399_v51  ;;  %v497_v18 = vld [vmem:[#allocation8 + $0xe0] sm:$0xff]  ;;  %v496_v23 = vld [vmem:[#allocation8 + $0xd8] sm:$0xff]  ;;  %v495_v26 = vld [vmem:[#allocation8 + $0xd0] sm:$0xff]  ;;  %1520 = vmatpush3.msra.mxu1 %v505_v50 }
 0x31b   :  { %1317 = vmatprep.subr.mxu0 %v497_v18  ;;  %v481_v21 = vld [vmem:[#allocation8 + $0x60] sm:$0xff] }
 0x31c   :  { %v404_v56 = vmul.f32 %v1937_v52, %v1937_v52  ;;  %v405_v57 = vmul.f32 %v1939_v53, %v1939_v53  ;;  %v406_v58 = vmul.f32 %v1941_v54, %v1941_v54  ;;  %v407_v60 = vmul.f32 %v1943_v55, %v1943_v55  ;;  %1318 = vmatpush3.msra.mxu0 %v481_v21  ;;  %v473_v51 = vld [vmem:[#allocation8 + $0x20] sm:$0xff] }
 0x31d   :  { %1319 = vmatprep.subr.mxu0 %v496_v23 }
 0x31e   :  { %v408_v59 = vadd.f32 %v405_v57, %v404_v56  ;;  %1320 = vmatpush3.msra.mxu0 %v480_v25  ;;  %v488_v56 = vld [vmem:[#allocation8 + $0x98] sm:$0xff] }
 0x31f   :  { %1321 = vmatprep.subr.mxu0 %v495_v26  ;;  %v504_v57 = vld [vmem:[#allocation8 + $0x118] sm:$0xff] }
 0x320   :  { %v409_v61 = vadd.f32 %v408_v59, %v406_v58  ;;  %1322 = vmatpush3.msra.mxu0 %v479_v29  ;;  %v472_v58 = vld [vmem:[#allocation8 + $0x18] sm:$0xff]  ;;  %v487_v59 = vld [vmem:[#allocation8 + $0x90] sm:$0xff]  ;;  %1521 = vmatprep.subr.mxu1 %v504_v57 }
 0x321   :  { %1323 = vmatprep.subr.mxu0 %v494_v32  ;;  %1522 = vmatpush3.msra.mxu1 %v504_v57 }
 0x322   :  { %v410_v62 = vadd.f32 %v409_v61, %v407_v60  ;;  %1324 = vmatpush3.msra.mxu0 %v478_v35  ;;  %v503_v60 = vld [vmem:[#allocation8 + $0x110] sm:$0xff] }
 0x323   :  { %1325 = vmatprep.subr.mxu0 %v493_v36  ;;  %v471_v61 = vld [vmem:[#allocation8 + $0x10] sm:$0xff]  ;;  %1523 = vmatprep.subr.mxu1 %v503_v60 }
 0x324   :  { %v411_v63 = vrot.slane %v410_v62, 4  ;;  %1326 = vmatpush3.msra.mxu0 %v477_v38  ;;  %1524 = vmatpush3.msra.mxu1 %v503_v60 }
 0x325   :  { %1327 = vmatprep.subr.mxu0 %v492_v39 }
 0x326   :  { %v412_v0 = vadd.f32 %v411_v63, %v410_v62  ;;  %1328 = vmatpush3.msra.mxu0 %v476_v41  ;;  %v486_v62 = vld [vmem:[#allocation8 + $0x88] sm:$0xff] }
 0x327   :  { %1329 = vmatprep.subr.mxu0 %v491_v42  ;;  %v502_v63 = vld [vmem:[#allocation8 + $0x108] sm:$0xff] }
 0x328   :  { %v413_v1 = vrot.slane %v412_v0, 2  ;;  %1330 = vmatpush3.msra.mxu0 %v475_v44  ;;  %1525 = vmatprep.subr.mxu1 %v502_v63 }
 0x329   :  { %1331 = vmatprep.subr.mxu0 %v490_v45  ;;  %1526 = vmatpush3.msra.mxu1 %v502_v63 }
 0x32a   :  { %v414_v2 = vadd.f32 %v413_v1, %v412_v0  ;;  %1332 = vmatpush3.msra.mxu0 %v474_v47  ;;  %v470_v0 = vld [vmem:[#allocation8 + $0x8] sm:$0xff]  ;;  %v485_v1 = vld [vmem:[#allocation8 + $0x80] sm:$0xff] }
 0x32b   :  { %1333 = vmatprep.subr.mxu0 %v489_v49 }
 0x32c   :  { %v415_v3 = vrot.slane %v414_v2, 1  ;;  %1334 = vmatpush3.msra.mxu0 %v473_v51 }
 0x32d   :  { %1335 = vmatprep.subr.mxu0 %v488_v56 }
 0x32e   :  { %v416_v4 = vadd.f32 %v415_v3, %v414_v2  ;;  %1336 = vmatpush3.msra.mxu0 %v472_v58  ;;  %v501_v2 = vld [vmem:[#allocation8 + $0x100] sm:$0xff] }
 0x32f   :  { %1337 = vmatprep.subr.mxu0 %v487_v59  ;;  %v469_v3 = vld [vmem:[#allocation8] sm:$0xff]  ;;  %1527 = vmatprep.subr.mxu1 %v501_v2 }
 0x330   :  { %417 = vrot.lane.b32.xlu0 %v416_v4, %s1792_s24  ;;  %1338 = vmatpush3.msra.mxu0 %v471_v61 }
 0x331   :  { %1339 = vmatprep.subr.mxu0 %v486_v62  ;;  %1528 = vmatpush3.msra.mxu1 %v501_v2 }
 0x332   :  { %1340 = vmatpush3.msra.mxu0 %v470_v0 }
 0x333   :  { %1341 = vmatprep.subr.mxu0 %v485_v1 }
 0x334   :  { %1342 = vmatpush3.msra.mxu0 %v469_v3 }
 0x3a2   :  { %v418_v5 = vpop.permute.xlu0 %417 }
 0x3a3   :  { %v419_v6 = vadd.f32 %v418_v5, %v416_v4 }
 0x3a5   :  { %420 = vrot.lane.b32.xlu1 %v419_v6, %s1797_s2 }
 0x417   :  { %v421_v7 = vpop.permute.xlu1 %420 }
 0x418   :  { %v422_v8 = vadd.f32 %v421_v7, %v419_v6 }
 0x41a   :  { %423 = vrot.lane.b32.xlu0 %v422_v8, %s1798_s29 }
 0x48c   :  { %v424_v19 = vpop.permute.xlu0 %423 }
 0x48d   :  { %v1956_v22 = vadd.f32 %v424_v19, %v422_v8  ;;  %v368_v8 = vld [vmem:[%s2074_s3] sm:$0x1] }
 0x48f   :  { %426 = vrot.lane.b32.xlu1 %v1956_v22, %s1799_s30 }
 0x501   :  { %v427_v4 = vpop.permute.xlu1 %426 }
 0x502   :  { %v428_v5 = vadd.f32 %v427_v4, %v1956_v22 }
 0x504   :  { %v429_v6 = vmul.f32 0.001953125, %v428_v5 }
 0x506   :  { %v430_v7 = vadd.f32 1e-05, %v429_v6 }
 0x508   :  { %1655 = vrsqrt.f32 %v430_v7 }
 0x515   :  { %v1656_v9 = vpop.eup %1655 }
 0x516   :  { %v432_v10 = vmul.f32 %v1656_v9, %v368_v8 }
 0x518   :  { %v437_v11 = vrot.slane %v432_v10, %v1934_v48 }
 0x51a   :  { %v439_v13 = vmul.f32 %v437_v11, %v1937_v52  ;;  %v440_v14 = vmul.f32 %v437_v11, %v1939_v53  ;;  %v441_v15 = vmul.f32 %v437_v11, %v1941_v54  ;;  %v442_v16 = vmul.f32 %v437_v11, %v1943_v55 }
 0x51c   :  { %v449_v17 = vadd.f32 %v1241_v12, %v439_v13  ;;  %v450_v18 = vadd.f32 %v1241_v12, %v440_v14  ;;  %v451_v19 = vadd.f32 %v1241_v12, %v441_v15  ;;  %v452_v20 = vadd.f32 %v1241_v12, %v442_v16 }
 0x51e   :  { %453 = vst [vmem:[#allocation2 + $0x8] sm:$0xff] %v449_v17  ;;  %454 = vst [vmem:[#allocation2 + $0x10] sm:$0xff] %v450_v18  ;;  %588 = vmatprep.mubr.f32.mxu0 %v449_v17 }
 0x51f   :  { %455 = vst [vmem:[#allocation2 + $0x28] sm:$0xff] %v451_v19  ;;  %456 = vst [vmem:[#allocation2 + $0x30] sm:$0xff] %v452_v20 }
 0x525   :  { %v465_v21 = vld [vmem:[#allocation2 + $0x9] sm:$0xff]  ;;  %v466_v23 = vld [vmem:[#allocation2 + $0x11] sm:$0xff] }
 0x526   :  { %v457_v22 = vld [vmem:[#allocation2 + $0x7] sm:$0xff]  ;;  %1529 = vmatprep.mubr.f32.mxu1 %v465_v21  ;;  %v458_v53 = vld [vmem:[#allocation2 + $0xf] sm:$0xff] }
 0x527   :  { %589 = vmatmul.mubr.f32.vlgmr.msra.gmra.mxu0 %v457_v22  ;;  %1530 = vmatmul.mubr.f32.vlgmr.msra.gmra.mxu1 %v466_v23  ;;  %v467_v52 = vld [vmem:[#allocation2 + $0x29] sm:$0xff]  ;;  %v468_v54 = vld [vmem:[#allocation2 + $0x31] sm:$0xff] }
 0x528   :  { %593 = vmatprep.mubr.f32.mxu0 %v450_v18  ;;  %1532 = vmatprep.mubr.f32.mxu1 %v467_v52  ;;  %v459_v55 = vld [vmem:[#allocation2 + $0x27] sm:$0xff]  ;;  %v460_v24 = vld [vmem:[#allocation2 + $0x2f] sm:$0xff] }
 0x52b   :  { %594 = vmatmul.mubr.f32.gmra.mxu0 %v458_v53  ;;  %1533 = vmatmul.mubr.f32.gmra.mxu1 %v468_v54 }
 0x52c   :  { %598 = vmatprep.mubr.f32.mxu0 %v451_v19 }
 0x52f   :  { %599 = vmatmul.mubr.f32.gmra.mxu0 %v459_v55 }
 0x530   :  { %603 = vmatprep.mubr.f32.mxu0 %v452_v20 }
 0x533   :  { %604 = vmatmul.mubr.f32.gmra.mxu0 %v460_v24 }
 0x5e7   :  { %v1343_v25 = vpop.f32.mrf.mxu0  ;;  %v1531_v26 = vpop.f32.mrf.mxu1 }
 0x5e9   :  { %v1344_v27 = vpop.f32.mrf.mxu0  ;;  %v675_v35 = vpop.f32.mrf.mxu1 }
 0x5ea   :  { %v1345_v32 = vadd.f32 %v1344_v27, %v1343_v25 }
 0x5eb   :  { %v1346_v29 = vpop.f32.mrf.mxu0  ;;  %v1534_v41 = vpop.f32.mrf.mxu1 }
 0x5ec   :  { %v591_v39 = vadd.f32 %v1345_v32, %v1242_v33 }
 0x5ed   :  { %v1347_v36 = vpop.f32.mrf.mxu0  ;;  %v685_v49 = vpop.f32.mrf.mxu1 }
 0x5ee   :  { %v1348_v37 = vadd.f32 %v1347_v36, %v1346_v29  ;;  %v676_v46 = vadd.f32 %v675_v35, %v591_v39  ;;  %v826_v39 = vld [vmem:[#allocation9 + $0xf8] sm:$0xff] }
 0x5ef   :  { %v1349_v38 = vpop.f32.mrf.mxu0  ;;  %1375 = vmatprep.subr.mxu0 %v826_v39 }
 0x5f0   :  { %v596_v40 = vadd.f32 %v1348_v37, %v1242_v33  ;;  %v696_v58 = vmax.f32 %v676_v46, 0.0 }
 0x5f1   :  { %v1350_v42 = vpop.f32.mrf.mxu0 }
 0x5f2   :  { %v681_v43 = vadd.f32 %v1531_v26, %v596_v40  ;;  %v1351_v44 = vadd.f32 %v1350_v42, %v1349_v38  ;;  %v842_v40 = vld [vmem:[#allocation9 + $0x178] sm:$0xff]  ;;  %v825_v42 = vld [vmem:[#allocation9 + $0xf0] sm:$0xff] }
 0x5f3   :  { %v1352_v45 = vpop.f32.mrf.mxu0  ;;  %1535 = vmatprep.subr.mxu1 %v842_v40 }
 0x5f4   :  { %v601_v47 = vadd.f32 %v1351_v44, %v1242_v33  ;;  %v697_v51 = vmax.f32 %v681_v43, 0.0  ;;  %1536 = vmatpush3.msra.mxu1 %v842_v40  ;;  %v841_v43 = vld [vmem:[#allocation9 + $0x170] sm:$0xff] }
 0x5f5   :  { %v1353_v50 = vpop.f32.mrf.mxu0  ;;  %v809_v44 = vld [vmem:[#allocation9 + $0x70] sm:$0xff]  ;;  %1537 = vmatprep.subr.mxu1 %v841_v43 }
 0x5f6   :  { %v686_v56 = vadd.f32 %v685_v49, %v601_v47  ;;  %v1354_v57 = vadd.f32 %v1353_v50, %v1352_v45  ;;  %v700_v61 = vadd.f32 %v697_v51, %v696_v58  ;;  %v824_v45 = vld [vmem:[#allocation9 + $0xe8] sm:$0xff]  ;;  %1538 = vmatpush3.msra.mxu1 %v841_v43 }
 0x5f7   :  { %v840_v47 = vld [vmem:[#allocation9 + $0x168] sm:$0xff] }
 0x5f8   :  { %v698_v59 = vmax.f32 %v686_v56, 0.0  ;;  %v606_v60 = vadd.f32 %v1354_v57, %v1242_v33  ;;  %v808_v49 = vld [vmem:[#allocation9 + $0x68] sm:$0xff]  ;;  %1539 = vmatprep.subr.mxu1 %v840_v47  ;;  %v839_v56 = vld [vmem:[#allocation9 + $0x160] sm:$0xff] }
 0x5f9   :  { %1540 = vmatpush3.msra.mxu1 %v840_v47  ;;  %v807_v57 = vld [vmem:[#allocation9 + $0x60] sm:$0xff] }
 0x5fa   :  { %v691_v62 = vadd.f32 %v1534_v41, %v606_v60  ;;  %v701_v63 = vadd.f32 %v700_v61, %v698_v59  ;;  %v810_v41 = vld [vmem:[#allocation9 + $0x78] sm:$0xff]  ;;  %1541 = vmatprep.subr.mxu1 %v839_v56  ;;  %v821_v61 = vld [vmem:[#allocation9 + $0xd0] sm:$0xff] }
 0x5fb   :  { %1376 = vmatpush3.msra.mxu0 %v810_v41  ;;  %1542 = vmatpush3.msra.mxu1 %v839_v56  ;;  %v806_v60 = vld [vmem:[#allocation9 + $0x58] sm:$0xff] }
 0x5fc   :  { %v699_v0 = vmax.f32 %v691_v62, 0.0  ;;  %1377 = vmatprep.subr.mxu0 %v825_v42  ;;  %v837_v62 = vld [vmem:[#allocation9 + $0x150] sm:$0xff]  ;;  %v1243_v42 = vld [vmem:[%s2079_s8] ss:$0 sm:$0xff] }
 0x5fd   :  { %1378 = vmatpush3.msra.mxu0 %v809_v44 }
 0x5fe   :  { %v702_v1 = vadd.f32 %v701_v63, %v699_v0  ;;  %1379 = vmatprep.subr.mxu0 %v824_v45  ;;  %v805_v63 = vld [vmem:[#allocation9 + $0x50] sm:$0xff] }
 0x5ff   :  { %1380 = vmatpush3.msra.mxu0 %v808_v49 }
 0x600   :  { %v703_v2 = vrot.slane %v702_v1, 4 }
 0x602   :  { %v704_v3 = vadd.f32 %v703_v2, %v702_v1  ;;  %v836_v1 = vld [vmem:[#allocation9 + $0x148] sm:$0xff] }
 0x603   :  { %v804_v2 = vld [vmem:[#allocation9 + $0x48] sm:$0xff] }
 0x604   :  { %v705_v4 = vrot.slane %v704_v3, 2 }
 0x606   :  { %v706_v5 = vadd.f32 %v705_v4, %v704_v3  ;;  %v819_v3 = vld [vmem:[#allocation9 + $0xc0] sm:$0xff] }
 0x607   :  { %v835_v4 = vld [vmem:[#allocation9 + $0x140] sm:$0xff] }
 0x608   :  { %v707_v6 = vrot.slane %v706_v5, 1 }
 0x60a   :  { %v708_v7 = vadd.f32 %v707_v6, %v706_v5  ;;  %v803_v5 = vld [vmem:[#allocation9 + $0x40] sm:$0xff]  ;;  %v818_v6 = vld [vmem:[#allocation9 + $0xb8] sm:$0xff] }
 0x60c   :  { %709 = vrot.lane.b32.xlu0 %v708_v7, %s1792_s24 }
 0x67e   :  { %v710_v8 = vpop.permute.xlu0 %709 }
 0x67f   :  { %v711_v9 = vadd.f32 %v710_v8, %v708_v7  ;;  %v834_v7 = vld [vmem:[#allocation9 + $0x138] sm:$0xff] }
 0x680   :  { %v802_v8 = vld [vmem:[#allocation9 + $0x38] sm:$0xff] }
 0x681   :  { %712 = vrot.lane.b32.xlu1 %v711_v9, %s1797_s2 }
 0x6f3   :  { %v713_v10 = vpop.permute.xlu1 %712 }
 0x6f4   :  { %v714_v11 = vadd.f32 %v713_v10, %v711_v9  ;;  %v817_v9 = vld [vmem:[#allocation9 + $0xb0] sm:$0xff] }
 0x6f5   :  { %v833_v10 = vld [vmem:[#allocation9 + $0x130] sm:$0xff] }
 0x6f6   :  { %715 = vrot.lane.b32.xlu0 %v714_v11, %s1798_s29 }
 0x768   :  { %v716_v12 = vpop.permute.xlu0 %715 }
 0x769   :  { %v717_v13 = vadd.f32 %v716_v12, %v714_v11  ;;  %v801_v11 = vld [vmem:[#allocation9 + $0x30] sm:$0xff]  ;;  %v816_v12 = vld [vmem:[#allocation9 + $0xa8] sm:$0xff] }
 0x76b   :  { %718 = vrot.lane.b32.xlu1 %v717_v13, %s1799_s30 }
 0x7dd   :  { %v719_v14 = vpop.permute.xlu1 %718 }
 0x7de   :  { %v720_v15 = vadd.f32 %v719_v14, %v717_v13  ;;  %v832_v13 = vld [vmem:[#allocation9 + $0x128] sm:$0xff] }
 0x7df   :  { %v800_v14 = vld [vmem:[#allocation9 + $0x28] sm:$0xff] }
 0x7e0   :  { %v721_v16 = vmul.f32 0.001953125, %v720_v15  ;;  %v815_v15 = vld [vmem:[#allocation9 + $0xa0] sm:$0xff] }
 0x7e2   :  { %v725_v17 = vrot.slane %v721_v16, %v1934_v48  ;;  %v831_v16 = vld [vmem:[#allocation9 + $0x120] sm:$0xff] }
 0x7e4   :  { %v1980_v18 = vsub.f32 %v696_v58, %v725_v17  ;;  %v1982_v19 = vsub.f32 %v697_v51, %v725_v17  ;;  %v1984_v20 = vsub.f32 %v698_v59, %v725_v17  ;;  %v1986_v21 = vsub.f32 %v699_v0, %v725_v17  ;;  %v823_v51 = vld [vmem:[#allocation9 + $0xe0] sm:$0xff]  ;;  %v822_v58 = vld [vmem:[#allocation9 + $0xd8] sm:$0xff]  ;;  %v820_v0 = vld [vmem:[#allocation9 + $0xc8] sm:$0xff] }
 0x7e5   :  { %1381 = vmatprep.subr.mxu0 %v823_v51  ;;  %v838_v59 = vld [vmem:[#allocation9 + $0x158] sm:$0xff]  ;;  %v799_v17 = vld [vmem:[#allocation9 + $0x20] sm:$0xff] }
 0x7e6   :  { %v730_v22 = vmul.f32 %v1980_v18, %v1980_v18  ;;  %v731_v23 = vmul.f32 %v1982_v19, %v1982_v19  ;;  %v732_v52 = vmul.f32 %v1984_v20, %v1984_v20  ;;  %v733_v54 = vmul.f32 %v1986_v21, %v1986_v21  ;;  %1382 = vmatpush3.msra.mxu0 %v807_v57 }
 0x7e7   :  { %1383 = vmatprep.subr.mxu0 %v822_v58  ;;  %1543 = vmatprep.subr.mxu1 %v838_v59 }
 0x7e8   :  { %v734_v53 = vadd.f32 %v731_v23, %v730_v22  ;;  %1384 = vmatpush3.msra.mxu0 %v806_v60  ;;  %1544 = vmatpush3.msra.mxu1 %v838_v59  ;;  %v814_v22 = vld [vmem:[#allocation9 + $0x98] sm:$0xff] }
 0x7e9   :  { %1385 = vmatprep.subr.mxu0 %v821_v61  ;;  %1545 = vmatprep.subr.mxu1 %v837_v62  ;;  %v830_v23 = vld [vmem:[#allocation9 + $0x118] sm:$0xff] }
 0x7ea   :  { %v735_v55 = vadd.f32 %v734_v53, %v732_v52  ;;  %1386 = vmatpush3.msra.mxu0 %v805_v63  ;;  %1546 = vmatpush3.msra.mxu1 %v837_v62  ;;  %v798_v52 = vld [vmem:[#allocation9 + $0x18] sm:$0xff]  ;;  %v813_v53 = vld [vmem:[#allocation9 + $0x90] sm:$0xff] }
 0x7eb   :  { %1387 = vmatprep.subr.mxu0 %v820_v0  ;;  %1547 = vmatprep.subr.mxu1 %v836_v1 }
 0x7ec   :  { %v736_v24 = vadd.f32 %v735_v55, %v733_v54  ;;  %1388 = vmatpush3.msra.mxu0 %v804_v2  ;;  %1548 = vmatpush3.msra.mxu1 %v836_v1  ;;  %v829_v54 = vld [vmem:[#allocation9 + $0x110] sm:$0xff]  ;;  %v1244_v1 = vld [vmem:[%s2081_s10] ss:$0 sm:$0xff] }
 0x7ed   :  { %1389 = vmatprep.subr.mxu0 %v819_v3  ;;  %1549 = vmatprep.subr.mxu1 %v835_v4  ;;  %v797_v55 = vld [vmem:[#allocation9 + $0x10] sm:$0xff] }
 0x7ee   :  { %v737_v25 = vrot.slane %v736_v24, 4  ;;  %1390 = vmatpush3.msra.mxu0 %v803_v5  ;;  %1550 = vmatpush3.msra.mxu1 %v835_v4 }
 0x7ef   :  { %1391 = vmatprep.subr.mxu0 %v818_v6  ;;  %1551 = vmatprep.subr.mxu1 %v834_v7 }
 0x7f0   :  { %v738_v26 = vadd.f32 %v737_v25, %v736_v24  ;;  %1392 = vmatpush3.msra.mxu0 %v802_v8  ;;  %1552 = vmatpush3.msra.mxu1 %v834_v7  ;;  %v812_v24 = vld [vmem:[#allocation9 + $0x88] sm:$0xff] }
 0x7f1   :  { %1393 = vmatprep.subr.mxu0 %v817_v9  ;;  %1553 = vmatprep.subr.mxu1 %v833_v10  ;;  %v828_v25 = vld [vmem:[#allocation9 + $0x108] sm:$0xff] }
 0x7f2   :  { %v739_v27 = vrot.slane %v738_v26, 2  ;;  %1394 = vmatpush3.msra.mxu0 %v801_v11  ;;  %1554 = vmatpush3.msra.mxu1 %v833_v10 }
 0x7f3   :  { %1395 = vmatprep.subr.mxu0 %v816_v12  ;;  %1555 = vmatprep.subr.mxu1 %v832_v13 }
 0x7f4   :  { %v740_v29 = vadd.f32 %v739_v27, %v738_v26  ;;  %1396 = vmatpush3.msra.mxu0 %v800_v14  ;;  %1556 = vmatpush3.msra.mxu1 %v832_v13  ;;  %v796_v26 = vld [vmem:[#allocation9 + $0x8] sm:$0xff]  ;;  %v811_v27 = vld [vmem:[#allocation9 + $0x80] sm:$0xff] }
 0x7f5   :  { %1397 = vmatprep.subr.mxu0 %v815_v15  ;;  %1557 = vmatprep.subr.mxu1 %v831_v16 }
 0x7f6   :  { %v741_v32 = vrot.slane %v740_v29, 1  ;;  %1398 = vmatpush3.msra.mxu0 %v799_v17  ;;  %1558 = vmatpush3.msra.mxu1 %v831_v16 }
 0x7f7   :  { %1399 = vmatprep.subr.mxu0 %v814_v22  ;;  %1559 = vmatprep.subr.mxu1 %v830_v23 }
 0x7f8   :  { %v742_v33 = vadd.f32 %v741_v32, %v740_v29  ;;  %1400 = vmatpush3.msra.mxu0 %v798_v52  ;;  %1560 = vmatpush3.msra.mxu1 %v830_v23  ;;  %v827_v29 = vld [vmem:[#allocation9 + $0x100] sm:$0xff] }
 0x7f9   :  { %1401 = vmatprep.subr.mxu0 %v813_v53  ;;  %1561 = vmatprep.subr.mxu1 %v829_v54  ;;  %v795_v32 = vld [vmem:[#allocation9] sm:$0xff] }
 0x7fa   :  { %743 = vrot.lane.b32.xlu0 %v742_v33, %s1792_s24  ;;  %1402 = vmatpush3.msra.mxu0 %v797_v55 }
 0x7fb   :  { %1562 = vmatpush3.msra.mxu1 %v829_v54  ;;  %1403 = vmatprep.subr.mxu0 %v812_v24 }
 0x7fc   :  { %1563 = vmatprep.subr.mxu1 %v828_v25  ;;  %1404 = vmatpush3.msra.mxu0 %v796_v26 }
 0x7fd   :  { %1564 = vmatpush3.msra.mxu1 %v828_v25  ;;  %1405 = vmatprep.subr.mxu0 %v811_v27 }
 0x7fe   :  { %1565 = vmatprep.subr.mxu1 %v827_v29  ;;  %1406 = vmatpush3.msra.mxu0 %v795_v32 }
 0x7ff   :  { %1566 = vmatpush3.msra.mxu1 %v827_v29 }
 0x86c   :  { %v744_v35 = vpop.permute.xlu0 %743 }
 0x86d   :  { %v745_v36 = vadd.f32 %v744_v35, %v742_v33 }
 0x86f   :  { %746 = vrot.lane.b32.xlu1 %v745_v36, %s1797_s2 }
 0x8e1   :  { %v747_v37 = vpop.permute.xlu1 %746 }
 0x8e2   :  { %v748_v38 = vadd.f32 %v747_v37, %v745_v36 }
 0x8e4   :  { %749 = vrot.lane.b32.xlu0 %v748_v38, %s1798_s29 }
 0x956   :  { %v750_v46 = vpop.permute.xlu0 %749 }
 0x957   :  { %v1999_v50 = vadd.f32 %v750_v46, %v748_v38  ;;  %v694_v38 = vld [vmem:[%s2078_s7] sm:$0x1] }
 0x959   :  { %752 = vrot.lane.b32.xlu1 %v1999_v50, %s1799_s30 }
 0x9cb   :  { %v753_v33 = vpop.permute.xlu1 %752 }
 0x9cc   :  { %v754_v35 = vadd.f32 %v753_v33, %v1999_v50 }
 0x9ce   :  { %v755_v36 = vmul.f32 0.001953125, %v754_v35 }
 0x9d0   :  { %v756_v37 = vadd.f32 1e-05, %v755_v36 }
 0x9d2   :  { %1657 = vrsqrt.f32 %v756_v37 }
 0x9df   :  { %v1658_v39 = vpop.eup %1657 }
 0x9e0   :  { %v758_v40 = vmul.f32 %v1658_v39, %v694_v38 }
 0x9e2   :  { %v763_v41 = vrot.slane %v758_v40, %v1934_v48 }
 0x9e4   :  { %v765_v43 = vmul.f32 %v763_v41, %v1980_v18  ;;  %v766_v44 = vmul.f32 %v763_v41, %v1982_v19  ;;  %v767_v45 = vmul.f32 %v763_v41, %v1984_v20  ;;  %v768_v46 = vmul.f32 %v763_v41, %v1986_v21 }
 0x9e6   :  { %v775_v47 = vadd.f32 %v1243_v42, %v765_v43  ;;  %v776_v49 = vadd.f32 %v1243_v42, %v766_v44  ;;  %v777_v50 = vadd.f32 %v1243_v42, %v767_v45  ;;  %v778_v51 = vadd.f32 %v1243_v42, %v768_v46 }
 0x9e8   :  { %779 = vst [vmem:[#allocation2 + $0x8] sm:$0xff] %v775_v47  ;;  %780 = vst [vmem:[#allocation2 + $0x10] sm:$0xff] %v776_v49  ;;  %914 = vmatprep.mubr.f32.mxu0 %v775_v47 }
 0x9e9   :  { %781 = vst [vmem:[#allocation2 + $0x28] sm:$0xff] %v777_v50  ;;  %782 = vst [vmem:[#allocation2 + $0x30] sm:$0xff] %v778_v51 }
 0x9ef   :  { %v791_v56 = vld [vmem:[#allocation2 + $0x9] sm:$0xff]  ;;  %v792_v58 = vld [vmem:[#allocation2 + $0x11] sm:$0xff] }
 0x9f0   :  { %v783_v57 = vld [vmem:[#allocation2 + $0x7] sm:$0xff]  ;;  %1567 = vmatprep.mubr.f32.mxu1 %v791_v56  ;;  %v784_v19 = vld [vmem:[#allocation2 + $0xf] sm:$0xff] }
 0x9f1   :  { %915 = vmatmul.mubr.f32.vlgmr.msra.gmra.mxu0 %v783_v57  ;;  %1568 = vmatmul.mubr.f32.vlgmr.msra.gmra.mxu1 %v792_v58  ;;  %v793_v18 = vld [vmem:[#allocation2 + $0x29] sm:$0xff]  ;;  %v794_v20 = vld [vmem:[#allocation2 + $0x31] sm:$0xff] }
 0x9f2   :  { %919 = vmatprep.mubr.f32.mxu0 %v776_v49  ;;  %1570 = vmatprep.mubr.f32.mxu1 %v793_v18  ;;  %v785_v21 = vld [vmem:[#allocation2 + $0x27] sm:$0xff]  ;;  %v786_v59 = vld [vmem:[#allocation2 + $0x2f] sm:$0xff] }
 0x9f5   :  { %920 = vmatmul.mubr.f32.gmra.mxu0 %v784_v19  ;;  %1571 = vmatmul.mubr.f32.gmra.mxu1 %v794_v20 }
 0x9f6   :  { %924 = vmatprep.mubr.f32.mxu0 %v777_v50  ;;  %1608 = vmatprep.mubr.f32.mxu1 %v1916_v31 }
 0x9f9   :  { %925 = vmatmul.mubr.f32.gmra.mxu0 %v785_v21 }
 0x9fa   :  { %929 = vmatprep.mubr.f32.mxu0 %v778_v51 }
 0x9fd   :  { %930 = vmatmul.mubr.f32.gmra.mxu0 %v786_v59 }
 0x9fe   :  { %1605 = vmatprep.mubr.f32.mxu0 %v1911_v28 }
 0xab1   :  { %v1407_v60 = vpop.f32.mrf.mxu0  ;;  %v1569_v61 = vpop.f32.mrf.mxu1 }
 0xab3   :  { %v1408_v62 = vpop.f32.mrf.mxu0  ;;  %v1001_v2 = vpop.f32.mrf.mxu1 }
 0xab4   :  { %v1409_v0 = vadd.f32 %v1408_v62, %v1407_v60 }
 0xab5   :  { %v1410_v63 = vpop.f32.mrf.mxu0  ;;  %v1572_v7 = vpop.f32.mrf.mxu1 }
 0xab6   :  { %v917_v5 = vadd.f32 %v1409_v0, %v1244_v1  ;;  %v1120_v0 = vld [vmem:[#allocation11 + $0x78] sm:$0xff] }
 0xab7   :  { %v1411_v3 = vpop.f32.mrf.mxu0  ;;  %v1011_v13 = vpop.f32.mrf.mxu1  ;;  %1573 = vmatprep.subr.mxu0 %v1120_v0  ;;  %1611 = vmatprep.subr.mxu1 %v1120_v0 }
 0xab8   :  { %v1412_v4 = vadd.f32 %v1411_v3, %v1410_v63  ;;  %v1002_v11 = vadd.f32 %v1001_v2, %v917_v5  ;;  %1574 = vmatpush3.msra.mxu0 %v1120_v0  ;;  %1627 = vmatpush3.msra.mxu1 %v1120_v0  ;;  %v1118_v2 = vld [vmem:[#allocation11 + $0x68] sm:$0xff]  ;;  %v1117_v3 = vld [vmem:[#allocation11 + $0x60] sm:$0xff]  ;;  %v1115_v5 = vld [vmem:[#allocation11 + $0x50] sm:$0xff] }
 0xab9   :  { %v1413_v31 = vpop.f32.mrf.mxu0 }
 0xaba   :  { %v922_v6 = vadd.f32 %v1412_v4, %v1244_v1  ;;  %v1022_v22 = vmax.f32 %v1002_v11, 0.0  ;;  %v1116_v4 = vld [vmem:[#allocation11 + $0x58] sm:$0xff]  ;;  %v1109_v11 = vld [vmem:[#allocation11 + $0x20] sm:$0xff] }
 0xabb   :  { %v1414_v8 = vpop.f32.mrf.mxu0 }
 0xabc   :  { %v1007_v9 = vadd.f32 %v1569_v61, %v922_v6  ;;  %v1415_v10 = vadd.f32 %v1414_v8, %v1413_v31  ;;  %v1113_v8 = vld [vmem:[#allocation11 + $0x40] sm:$0xff] }
 0xabd   :  { %v1416_v28 = vpop.f32.mrf.mxu0 }
 0xabe   :  { %v927_v12 = vadd.f32 %v1415_v10, %v1244_v1  ;;  %v1023_v15 = vmax.f32 %v1007_v9, 0.0  ;;  %v1112_v9 = vld [vmem:[#allocation11 + $0x38] sm:$0xff]  ;;  %v1111_v10 = vld [vmem:[#allocation11 + $0x30] sm:$0xff] }
 0xabf   :  { %v1417_v14 = vpop.f32.mrf.mxu0 }
 0xac0   :  { %v1012_v16 = vadd.f32 %v1011_v13, %v927_v12  ;;  %v1418_v17 = vadd.f32 %v1417_v14, %v1416_v28  ;;  %v1026_v53 = vadd.f32 %v1023_v15, %v1022_v22  ;;  %v1110_v28 = vld [vmem:[#allocation11 + $0x28] sm:$0xff]  ;;  %v1108_v12 = vld [vmem:[#allocation11 + $0x18] sm:$0xff]  ;;  %v1107_v13 = vld [vmem:[#allocation11 + $0x10] sm:$0xff] }
 0xac1   :  { %v1106_v14 = vld [vmem:[#allocation11 + $0x8] sm:$0xff] }
 0xac2   :  { %v1024_v23 = vmax.f32 %v1012_v16, 0.0  ;;  %v932_v52 = vadd.f32 %v1418_v17, %v1244_v1  ;;  %v1119_v1 = vld [vmem:[#allocation11 + $0x70] sm:$0xff] }
 0xac3   :  { %1575 = vmatprep.subr.mxu0 %v1119_v1  ;;  %1612 = vmatprep.subr.mxu1 %v1119_v1 }
 0xac4   :  { %v1017_v54 = vadd.f32 %v1572_v7, %v932_v52  ;;  %v1027_v55 = vadd.f32 %v1026_v53, %v1024_v23  ;;  %1576 = vmatpush3.msra.mxu0 %v1119_v1  ;;  %1628 = vmatpush3.msra.mxu1 %v1119_v1  ;;  %v1114_v7 = vld [vmem:[#allocation11 + $0x48] sm:$0xff] }
 0xac5   :  { %1577 = vmatprep.subr.mxu0 %v1118_v2  ;;  %1613 = vmatprep.subr.mxu1 %v1118_v2 }
 0xac6   :  { %v1025_v24 = vmax.f32 %v1017_v54, 0.0  ;;  %1578 = vmatpush3.msra.mxu0 %v1118_v2  ;;  %1629 = vmatpush3.msra.mxu1 %v1118_v2 }
 0xac7   :  { %1579 = vmatprep.subr.mxu0 %v1117_v3  ;;  %1614 = vmatprep.subr.mxu1 %v1117_v3 }
 0xac8   :  { %v1028_v25 = vadd.f32 %v1027_v55, %v1025_v24  ;;  %1580 = vmatpush3.msra.mxu0 %v1117_v3  ;;  %1630 = vmatpush3.msra.mxu1 %v1117_v3 }
 0xac9   :  { %1581 = vmatprep.subr.mxu0 %v1116_v4  ;;  %1615 = vmatprep.subr.mxu1 %v1116_v4 }
 0xaca   :  { %v1029_v26 = vrot.slane %v1028_v25, 4  ;;  %1582 = vmatpush3.msra.mxu0 %v1116_v4  ;;  %1631 = vmatpush3.msra.mxu1 %v1116_v4 }
 0xacb   :  { %1583 = vmatprep.subr.mxu0 %v1115_v5  ;;  %1616 = vmatprep.subr.mxu1 %v1115_v5 }
 0xacc   :  { %v1030_v27 = vadd.f32 %v1029_v26, %v1028_v25  ;;  %1584 = vmatpush3.msra.mxu0 %v1115_v5  ;;  %1632 = vmatpush3.msra.mxu1 %v1115_v5 }
 0xacd   :  { %1585 = vmatprep.subr.mxu0 %v1114_v7  ;;  %1617 = vmatprep.subr.mxu1 %v1114_v7 }
 0xace   :  { %v1031_v29 = vrot.slane %v1030_v27, 2  ;;  %1586 = vmatpush3.msra.mxu0 %v1114_v7  ;;  %1633 = vmatpush3.msra.mxu1 %v1114_v7 }
 0xacf   :  { %1587 = vmatprep.subr.mxu0 %v1113_v8  ;;  %1618 = vmatprep.subr.mxu1 %v1113_v8 }
 0xad0   :  { %v1032_v32 = vadd.f32 %v1031_v29, %v1030_v27  ;;  %1588 = vmatpush3.msra.mxu0 %v1113_v8  ;;  %1634 = vmatpush3.msra.mxu1 %v1113_v8  ;;  %v1246_v29 = vld [vmem:[%s2085_s14] ss:$0 sm:$0xff] }
 0xad1   :  { %1589 = vmatprep.subr.mxu0 %v1112_v9  ;;  %1619 = vmatprep.subr.mxu1 %v1112_v9 }
 0xad2   :  { %v1033_v33 = vrot.slane %v1032_v32, 1  ;;  %1590 = vmatpush3.msra.mxu0 %v1112_v9  ;;  %1635 = vmatpush3.msra.mxu1 %v1112_v9 }
 0xad3   :  { %1591 = vmatprep.subr.mxu0 %v1111_v10  ;;  %1620 = vmatprep.subr.mxu1 %v1111_v10 }
 0xad4   :  { %v1034_v35 = vadd.f32 %v1033_v33, %v1032_v32  ;;  %1592 = vmatpush3.msra.mxu0 %v1111_v10  ;;  %1636 = vmatpush3.msra.mxu1 %v1111_v10 }
 0xad5   :  { %1593 = vmatprep.subr.mxu0 %v1110_v28  ;;  %1621 = vmatprep.subr.mxu1 %v1110_v28 }
 0xad6   :  { %1035 = vrot.lane.b32.xlu0 %v1034_v35, %s1792_s24  ;;  %1594 = vmatpush3.msra.mxu0 %v1110_v28 }
 0xad7   :  { %1637 = vmatpush3.msra.mxu1 %v1110_v28  ;;  %1595 = vmatprep.subr.mxu0 %v1109_v11 }
 0xad8   :  { %1622 = vmatprep.subr.mxu1 %v1109_v11  ;;  %1596 = vmatpush3.msra.mxu0 %v1109_v11 }
 0xad9   :  { %1638 = vmatpush3.msra.mxu1 %v1109_v11  ;;  %1597 = vmatprep.subr.mxu0 %v1108_v12 }
 0xada   :  { %1623 = vmatprep.subr.mxu1 %v1108_v12  ;;  %1598 = vmatpush3.msra.mxu0 %v1108_v12 }
 0xadb   :  { %1639 = vmatpush3.msra.mxu1 %v1108_v12  ;;  %1599 = vmatprep.subr.mxu0 %v1107_v13 }
 0xadc   :  { %1624 = vmatprep.subr.mxu1 %v1107_v13  ;;  %1600 = vmatpush3.msra.mxu0 %v1107_v13 }
 0xadd   :  { %1640 = vmatpush3.msra.mxu1 %v1107_v13  ;;  %1601 = vmatprep.subr.mxu0 %v1106_v14 }
 0xade   :  { %1625 = vmatprep.subr.mxu1 %v1106_v14  ;;  %1602 = vmatpush3.msra.mxu0 %v1106_v14 }
 0xadf   :  { %1641 = vmatpush3.msra.mxu1 %v1106_v14 }
 0xb48   :  { %v1036_v36 = vpop.permute.xlu0 %1035 }
 0xb49   :  { %v1037_v37 = vadd.f32 %v1036_v36, %v1034_v35  ;;  %v1245_v35 = vld [vmem:[%s2083_s12] ss:$0 sm:$0xff] }
 0xb4b   :  { %1038 = vrot.lane.b32.xlu1 %v1037_v37, %s1797_s2 }
 0xbbd   :  { %v1039_v38 = vpop.permute.xlu1 %1038 }
 0xbbe   :  { %v1040_v39 = vadd.f32 %v1039_v38, %v1037_v37 }
 0xbc0   :  { %1041 = vrot.lane.b32.xlu0 %v1040_v39, %s1798_s29 }
 0xc32   :  { %v1042_v40 = vpop.permute.xlu0 %1041 }
 0xc33   :  { %v1043_v41 = vadd.f32 %v1042_v40, %v1040_v39 }
 0xc35   :  { %1044 = vrot.lane.b32.xlu1 %v1043_v41, %s1799_s30 }
 0xca7   :  { %v1045_v42 = vpop.permute.xlu1 %1044 }
 0xca8   :  { %v1046_v43 = vadd.f32 %v1045_v42, %v1043_v41 }
 0xcaa   :  { %v1047_v44 = vmul.f32 0.001953125, %v1046_v43 }
 0xcac   :  { %v1051_v45 = vrot.slane %v1047_v44, %v1934_v48 }
 0xcae   :  { %v2025_v46 = vsub.f32 %v1022_v22, %v1051_v45  ;;  %v2027_v47 = vsub.f32 %v1023_v15, %v1051_v45  ;;  %v2029_v49 = vsub.f32 %v1024_v23, %v1051_v45  ;;  %v2031_v50 = vsub.f32 %v1025_v24, %v1051_v45  ;;  %v1105_v15 = vld [vmem:[#allocation11] sm:$0xff] }
 0xcaf   :  { %1603 = vmatprep.subr.mxu0 %v1105_v15  ;;  %1626 = vmatprep.subr.mxu1 %v1105_v15 }
 0xcb0   :  { %v1056_v51 = vmul.f32 %v2025_v46, %v2025_v46  ;;  %v1057_v56 = vmul.f32 %v2027_v47, %v2027_v47  ;;  %v1058_v57 = vmul.f32 %v2029_v49, %v2029_v49  ;;  %v1059_v18 = vmul.f32 %v2031_v50, %v2031_v50  ;;  %1604 = vmatpush3.msra.mxu0 %v1105_v15 }
 0xcb1   :  { %1642 = vmatpush3.msra.mxu1 %v1105_v15  ;;  %1606 = vmatmul.mubr.f32.vlgmr.msra.gmra.mxu0 %v1914_v30  ;;  %v1020_v30 = vld [vmem:[%s2082_s11] sm:$0x1]  ;;  %s1800_s11 = smov [#allocation12]  }
 0xcb2   :  { %v1060_v58 = vadd.f32 %v1057_v56, %v1056_v51  ;;  %1609 = vmatmul.mubr.f32.vlgmr.msra.gmra.mxu1 %v1920_v34  ;;  %s1226_s14 = sshll.u32 %s1800_s11, 4  ;;  %s1227_s14 = int_to_ptr.vmem [resolvable:$true] %s1226_s14 }
 0xcb3   :  { %s1761_s12 = scalar_lea.vmem %s1227_s14, 512  ;;  %p1766_p12 = scmp.lt.s32.totalorder %s1227_s14, %s1227_s14 }
 0xcb4   :  { %v1061_v19 = vadd.f32 %v1060_v58, %v1058_v57  ;;  %p1762_p11 = scmp.ne.s32.totalorder %s1227_s14, %s1761_s12  ;;  %p1767_p13 = scmp.lt.s32.totalorder %s1761_s12, %s1761_s12 }
 0xcb6   :  { %v1062_v20 = vadd.f32 %v1061_v19, %v1059_v18  ;;  %p1768_p0 = por %p1767_p13, %p1766_p12 }
 0xcb8   :  { %v1063_v21 = vrot.slane %v1062_v20, 4  ;;  %p1769_p1 = pnand %p1768_p0, %p1762_p11 }
 0xcba   :  { %v1064_v59 = vadd.f32 %v1063_v21, %v1062_v20 }
 0xcbc   :  { %v1065_v60 = vrot.slane %v1064_v59, 2 }
 0xcbe   :  { %v1066_v61 = vadd.f32 %v1065_v60, %v1064_v59 }
 0xcc0   :  { %v1067_v62 = vrot.slane %v1066_v61, 1 }
 0xcc2   :  { %v1068_v63 = vadd.f32 %v1067_v62, %v1066_v61 }
 0xcc4   :  { %1069 = vrot.lane.b32.xlu0 %v1068_v63, %s1792_s24 }
 0xd36   :  { %v1070_v31 = vpop.permute.xlu0 %1069 }
 0xd37   :  { %v2042_v6 = vadd.f32 %v1070_v31, %v1068_v63 }
 0xd39   :  { %1072 = vrot.lane.b32.xlu1 %v2042_v6, %s1797_s2 }
 0xd71   :  { %v1607_v24 = vpop.f32.mrf.mxu0 }
 0xd72   :  { %v1610_v34 = vpop.f32.mrf.mxu1  ;;  %v1200_v40 = vadd.f32 %v1607_v24, %v1246_v29 }
 0xd73   :  { %v1194_v32 = vpop.f32.mrf.mxu0 }
 0xd74   :  { %v1204_v33 = vpop.f32.mrf.mxu1  ;;  %v1195_v41 = vadd.f32 %v1246_v29, %v1194_v32 }
 0xd75   :  { %v1205_v42 = vadd.f32 %v1246_v29, %v1204_v33 }
 0xdab   :  { %v1073_v16 = vpop.permute.xlu1 %1072 }
 0xdac   :  { %v1074_v17 = vadd.f32 %v1073_v16, %v2042_v6 }
 0xdae   :  { %1075 = vrot.lane.b32.xlu0 %v1074_v17, %s1798_s29 }
 0xe20   :  { %v1076_v22 = vpop.permute.xlu0 %1075 }
 0xe21   :  { %v1077_v23 = vadd.f32 %v1076_v22, %v1074_v17 }
 0xe23   :  { %1078 = vrot.lane.b32.xlu1 %v1077_v23, %s1799_s30 }
 0xe95   :  { %v1079_v52 = vpop.permute.xlu1 %1078 }
 0xe96   :  { %v1080_v53 = vadd.f32 %v1079_v52, %v1077_v23 }
 0xe98   :  { %v1081_v54 = vmul.f32 0.001953125, %v1080_v53 }
 0xe9a   :  { %v1082_v55 = vadd.f32 1e-05, %v1081_v54 }
 0xe9c   :  { %1659 = vrsqrt.f32 %v1082_v55 }
 0xea9   :  { %v1660_v25 = vpop.eup %1659 }
 0xeaa   :  { %v1084_v26 = vmul.f32 %v1660_v25, %v1020_v30 }
 0xeac   :  { %v1089_v27 = vrot.slane %v1084_v26, %v1934_v48  ;;  %v1210_v48 = vadd.f32 %v1610_v34, %v1246_v29 }
 0xeae   :  { %v1092_v36 = vmul.f32 %v1089_v27, %v2027_v47  ;;  %v1094_v37 = vmul.f32 %v1089_v27, %v2031_v50  ;;  %v1091_v38 = vmul.f32 %v1089_v27, %v2025_v46  ;;  %v1093_v39 = vmul.f32 %v1089_v27, %v2029_v49 }
 0xeb0   :  { %v1102_v43 = vadd.f32 %v1245_v35, %v1092_v36  ;;  %v1104_v44 = vadd.f32 %v1245_v35, %v1094_v37  ;;  %v1101_v45 = vadd.f32 %v1245_v35, %v1091_v38  ;;  %v1103_v51 = vadd.f32 %v1245_v35, %v1093_v39 }
 0xeb2   :  { %v1214_v56 = vadd.f32 %v1200_v40, %v1102_v43  ;;  %v1216_v57 = vadd.f32 %v1210_v48, %v1104_v44  ;;  %v1213_v58 = vadd.f32 %v1195_v41, %v1101_v45  ;;  %v1215_v47 = vadd.f32 %v1205_v42, %v1103_v51 }
 0xeb4   :  { %1218 = vst [vmem:[#allocation12 + $0x8] sm:$0xff] %v1214_v56  ;;  %1220 = vst [vmem:[#allocation12 + $0x18] sm:$0xff] %v1216_v57 }
 0xeb5   :  { %1217 = vst [vmem:[#allocation12] sm:$0xff] %v1213_v58  ;;  %1219 = vst [vmem:[#allocation12 + $0x10] sm:$0xff] %v1215_v47 }
 0xeb6   :  { %1772 = shalt.err (!%p1769_p1)
}
 0xeb7   :  { %1232 = dma.vmem_to_hbm [thread:$0]  %s1227_s14, 512, %s2086_s15, [#allocation5], %s1791_s23, %s1791_s23, %s1792_s24  }
 0xeb8   :  { %1787 = dma.done.wait [#allocation5], 512  }
 0xeb9   :  { %1788 = vsyncadd [#allocation5], 4294966784 }
 0xeba   :  { %1236 = vsyncpa [#allocation4], 1 }
 0xebb   :  { %1237 = vsyncpa [#allocation7], 1 }
 0xebc   :  { %1238 = vsyncpa [#allocation10], 1 }
 0xebd   :  { %1239 = vsyncpa [#allocation5], 1 }

</bundles_post_ra>
